<compile_context>
chip_gen: v6e
topology: v6e:2x2x1
jax: 0.10.0
libtpu: 0.0.40
codegen_flags: <defaults>
</compile_context>

<pallas_src>
import numpy as np
import jax
import jax.numpy as jnp
from jax.experimental import pallas as pl
from jax.experimental.pallas import tpu as pltpu

NUM_CHANNELS = 4      # configs.ParamsConfig.NUM_CHANNELS (synthetic, small)
LATENT_DIMS = 8       # configs.ParamsConfig.LATENT_DIMS  (synthetic, small)
INPUT_SHAPE = 16      # the module's global `input_shape` (target width)
BATCH = 2

# Architecture constants fixed by the PyTorch module definition.
H_FC = 20
CIN2, COUT2, KH2, KW2 = 2 * NUM_CHANNELS, NUM_CHANNELS, 5, 3
SH2, PH2, DH2, PW2 = 3, 2, 2, 1
CIN1, COUT1, KH1, KW1 = NUM_CHANNELS, 1, 7, 5
SH1, PH1, DH1, PW1 = 3, 3, 2, 2


def _convT_len(n, k, s, p, d):
    return (n - 1) * s - 2 * p + d * (k - 1) + 1


H2 = _convT_len(H_FC, KH2, SH2, PH2, DH2)     # 62
H3 = _convT_len(H2, KH1, SH1, PH1, DH1)       # 190
F_FC = CIN2 * H_FC                            # 160
CH2 = COUT2 * H2                              # 248
NBLK = 256                                    # lane-tile-aligned block width (>= CH2, H3)

assert INPUT_SHAPE >= 7                       # left / interior / right column split
assert 2 * PW2 == KW2 - 1 and 2 * PW1 == KW1 - 1   # both convs preserve the width
assert CH2 <= NBLK and H3 <= NBLK


# --------------------- One-time weight preprocessing -------------------------

def _h_select(h_in, h_out, kh, stride, pad, dil):
    """S[k, h, ho] = 1 where transpose-conv input row h with kernel row k hits output
    row ho (after the padding crop)."""
    s = np.zeros((kh, h_in, h_out), np.float64)
    for k in range(kh):
        for h in range(h_in):
            ho = h * stride - pad + k * dil
            if 0 <= ho < h_out:
                s[k, h, ho] = 1.0
    return s


def prepare_decoder_params(params):
    """Pure algebra / layout on the parameters; run once per model.

    Returns:
      wa  (LATENT_DIMS, 3*NBLK) f32 : fc folded through the conv2 H-transform; the three
                                      256-wide lane blocks are the three distinct conv2
                                      output columns [left | interior(mid) | right].
      ba  (1, 3*NBLK)           f32 : matching bias (fc bias folded through + conv2 bias).
      wb1 (2*NBLK, 4*NBLK)     bf16 : conv1 H-transform acting on [z_left | z_mid];
                                      N blocks = output columns [0 | 1 | 2 | interior].
      wb2 (2*NBLK, 3*NBLK)     bf16 : conv1 H-transform acting on [z_mid | z_right];
                                      N blocks = output columns [W-3 | W-2 | W-1].
      b1  (1,)                  f32 : conv1 bias (scalar, added before the sigmoid).
    """
    w_fc, b_fc, w2, b2, w1, b1 = [np.asarray(p, np.float64) for p in params]

    # ---- conv2 H-transform: a2[kw][(ci*20+h), (co*62+ho)] -------------------
    s2 = _h_select(H_FC, H2, KH2, SH2, PH2, DH2)
    a2 = np.einsum('iokw,khH->wihoH', w2, s2).reshape(KW2, F_FC, CH2)
    # AdaptiveMaxPool2d((20, W)) on a width-1 map is an exact broadcast, so conv2's
    # input is constant along W and only 3 distinct output columns exist:
    a2v = [a2[0] + a2[1],              # wo2 == 0          (left edge)
           a2[0] + a2[1] + a2[2],      # 0 < wo2 < W-1     (interior / mid)
           a2[1] + a2[2]]              # wo2 == W-1        (right edge)
    b2_full = np.repeat(b2, H2)[None, :]                       # (1, 248), co-major

    # Fold the fc layer:  z_v = relu(x @ (w_fc @ a2v[v]) + (b_fc @ a2v[v] + b2)).
    wa = np.zeros((LATENT_DIMS, 3 * NBLK), np.float64)
    ba = np.zeros((1, 3 * NBLK), np.float64)
    for v in range(3):
        wa[:, v * NBLK: v * NBLK + CH2] = w_fc @ a2v[v]
        ba[:, v * NBLK: v * NBLK + CH2] = b_fc[None, :] @ a2v[v] + b2_full

    # ---- conv1 H-transform: a1[kw][(ci*62+h), ho] ----------------------------
    s1 = _h_select(H2, H3, KH1, SH1, PH1, DH1)
    a1 = np.einsum('iokw,khH->wihH', w1, s1).reshape(KW1, CIN1 * H2, H3)
    pref = np.cumsum(a1, axis=0)                  # pref[k] = A1[0] + ... + A1[k]
    suf = np.cumsum(a1[::-1], axis=0)[::-1]       # suf[k]  = A1[k] + ... + A1[KW1-1]

    # Only 7 distinct conv1 output columns exist (W preserved, stride_w = dil_w = 1):
    #   wo = 0,1,2      : z_mid @ pref[wo+1] + z_left  @ a1[wo+2]
    #   interior        : z_mid @ pref[4]
    #   wo = W-3+j      : z_mid @ suf[j+1]   + z_right @ a1[j]        (j = 0,1,2)
    wb1 = np.zeros((2 * NBLK, 4 * NBLK), np.float64)    # K rows: [z_left | z_mid]
    for j in range(3):                                  # output column wo = j
        wb1[0:CH2,            j * NBLK: j * NBLK + H3] = a1[j + 2]       # z_left taps
        wb1[NBLK:NBLK + CH2,  j * NBLK: j * NBLK + H3] = pref[j + 1]     # z_mid taps
    wb1[NBLK:NBLK + CH2, 3 * NBLK: 3 * NBLK + H3] = pref[KW1 - 1]        # interior col

    wb2 = np.zeros((2 * NBLK, 3 * NBLK), np.float64)    # K rows: [z_mid | z_right]
    for j in range(3):                                  # output column wo = W-3+j
        wb2[0:CH2,            j * NBLK: j * NBLK + H3] = suf[j + 1]      # z_mid taps
        wb2[NBLK:NBLK + CH2,  j * NBLK: j * NBLK + H3] = a1[j]           # z_right taps

    return (jnp.asarray(wa, jnp.float32),
            jnp.asarray(ba, jnp.float32),
            jnp.asarray(wb1, jnp.bfloat16),
            jnp.asarray(wb2, jnp.bfloat16),
            jnp.asarray(b1, jnp.float32).reshape(1))


# ------------------------------ Fused kernel ---------------------------------

def _decoder_kernel(x_ref, wa_ref, ba_ref, wb1_ref, wb2_ref, b1_ref, o_ref):
    B, W, _ = o_ref.shape
    n_int = W - 6                       # number of identical interior output columns

    # ---- Stage A: fc + view + AdaptiveMaxPool(=broadcast) + conv2 + ReLU, all
    #      fused into ONE MXU matmul.  Z lane blocks: [z_left | z_mid | z_right].
    z = jnp.maximum(
        jnp.dot(x_ref[...], wa_ref[...], preferred_element_type=jnp.float32)
        + ba_ref[...], 0.0)                                   # (B, 3*NBLK) f32
    zb = z.astype(jnp.bfloat16)

    # ---- Stage B: conv1 via two stacked matmuls on 256-aligned slices of Z.
    out_l = jnp.dot(zb[:, 0:2 * NBLK], wb1_ref[...],
                    preferred_element_type=jnp.float32)       # (B, 4*NBLK): wo0|wo1|wo2|int
    out_r = jnp.dot(zb[:, NBLK:3 * NBLK], wb2_ref[...],
                    preferred_element_type=jnp.float32)       # (B, 3*NBLK): wo13|wo14|wo15

    b1 = b1_ref[0]
    s_l = 1.0 / (1.0 + jnp.exp(-(out_l + b1)))                # sigmoid (EUP)
    s_r = 1.0 / (1.0 + jnp.exp(-(out_r + b1)))

    # ---- Assemble the lane-dense (B, W, 190) output: 3 left-edge rows, n_int
    #      identical interior rows, 3 right-edge rows; single full store.
    rows = [s_l[:, 0 * NBLK:0 * NBLK + H3][:, None, :],
            s_l[:, 1 * NBLK:1 * NBLK + H3][:, None, :],
            s_l[:, 2 * NBLK:2 * NBLK + H3][:, None, :],
            jnp.broadcast_to(s_l[:, 3 * NBLK:3 * NBLK + H3][:, None, :],
                             (B, n_int, H3)),
            s_r[:, 0 * NBLK:0 * NBLK + H3][:, None, :],
            s_r[:, 1 * NBLK:1 * NBLK + H3][:, None, :],
            s_r[:, 2 * NBLK:2 * NBLK + H3][:, None, :]]
    o_ref[...] = jnp.concatenate(rows, axis=1)


# ------------------------------- Wrapper --------------------------------------

@jax.jit
def decoder_forward(x, prepped):
    wa, ba, wb1, wb2, b1 = prepped
    B = x.shape[0]
    out = pl.pallas_call(
        _decoder_kernel,
        out_shape=jax.ShapeDtypeStruct((B, INPUT_SHAPE, H3), jnp.float32),
        in_specs=[
            pl.BlockSpec(memory_space=pltpu.MemorySpace.VMEM),   # x            (B, 8)
            pl.BlockSpec(memory_space=pltpu.MemorySpace.VMEM),   # wa   f32  (8, 768)
            pl.BlockSpec(memory_space=pltpu.MemorySpace.VMEM),   # ba   f32  (1, 768)
            pl.BlockSpec(memory_space=pltpu.MemorySpace.VMEM),   # wb1  bf16 (512, 1024)
            pl.BlockSpec(memory_space=pltpu.MemorySpace.VMEM),   # wb2  bf16 (512, 768)
            pl.BlockSpec(memory_space=pltpu.MemorySpace.SMEM),   # b1   f32  (1,)
        ],
        out_specs=pl.BlockSpec(memory_space=pltpu.MemorySpace.VMEM),
    )(x, wa, ba, wb1, wb2, b1)
    # lane-dense kernel output (B, W, 190) -> NCHW (B, 1, 190, W)
    return jnp.transpose(out, (0, 2, 1))[:, None, :, :]


# ----------------------- Pure NumPy reference --------------------------------

def _conv_transpose_ref(x, w, b, stride, padding, dilation):
    B, Cin, H, W = x.shape
    _, Cout, KH, KW = w.shape
    sh, sw = stride
    ph, pw = padding
    dh, dw = dilation
    Hf = (H - 1) * sh + dh * (KH - 1) + 1
    Wf = (W - 1) * sw + dw * (KW - 1) + 1
    full = np.zeros((B, Cout, Hf, Wf), np.float64)
    for ci in range(Cin):
        for co in range(Cout):
            for kh in range(KH):
                for kw in range(KW):
                    full[:, co,
                         kh * dh:kh * dh + (H - 1) * sh + 1:sh,
                         kw * dw:kw * dw + (W - 1) * sw + 1:sw] += (
                        x[:, ci] * float(w[ci, co, kh, kw]))
    return full[:, :, ph:Hf - ph, pw:Wf - pw] + b.reshape(1, Cout, 1, 1)


def _decoder_ref(x, params):
    w_fc, b_fc, w2, b2, w1, b1 = [np.asarray(p, np.float64) for p in params]
    x = np.asarray(x, np.float64)
    y = x @ w_fc + b_fc
    y = y.reshape(x.shape[0], 2 * NUM_CHANNELS, 20, 1)
    y = np.repeat(y, INPUT_SHAPE, axis=3)        # AdaptiveMaxPool on a width-1 map
    y = np.maximum(_conv_transpose_ref(y, w2, b2, (3, 1), (2, 1), (2, 1)), 0.0)
    y = _conv_transpose_ref(y, w1, b1, (3, 1), (3, 2), (2, 1))
    return 1.0 / (1.0 + np.exp(-y))


# ------------------------------- Main -----------------------------------------

if __name__ == "__main__":
    key = jax.random.PRNGKey(0)
    ks = jax.random.split(key, 7)
    F = 2 * NUM_CHANNELS * 20

    # Deterministic synthetic parameters (shapes follow the PyTorch module).
    w_fc = jax.random.normal(ks[0], (LATENT_DIMS, F), jnp.float32) * 0.2
    b_fc = jax.random.normal(ks[1], (F,), jnp.float32) * 0.1
    w2 = jax.random.normal(ks[2], (2 * NUM_CHANNELS, NUM_CHANNELS, 5, 3), jnp.float32) * 0.2
    b2 = jax.random.normal(ks[3], (NUM_CHANNELS,), jnp.float32) * 0.1
    w1 = jax.random.normal(ks[4], (NUM_CHANNELS, 1, 7, 5), jnp.float32) * 0.2
    b1 = jax.random.normal(ks[5], (1,), jnp.float32) * 0.1
    params = (w_fc, b_fc, w2, b2, w1, b1)

    x = jax.random.normal(ks[6], (BATCH, LATENT_DIMS), jnp.float32)

    prepped = prepare_decoder_params(params)          # one-time weight prep
    out = jax.block_until_ready(decoder_forward(x, prepped))
    assert out.shape == (BATCH, 1, H3, INPUT_SHAPE), out.shape

    ref = _decoder_ref(np.asarray(x), params)
    # Tolerance budgets for the bf16 conv1-transform operands (expected max error
    # ~1-2e-3 after the sigmoid); a structural error would be orders of magnitude larger.
    np.testing.assert_allclose(np.asarray(out), ref.astype(np.float32),
                               rtol=5e-3, atol=5e-3)
    print("KERNEL_OK")
</pallas_src>

<mosaic_0001>
module attributes {stable_mosaic.version = 11 : i64} {
  func.func @_decoder_kernel(%arg0: memref<2x8xf32, #tpu.memory_space<vmem>>, %arg1: memref<8x768xf32, #tpu.memory_space<vmem>>, %arg2: memref<1x768xf32, #tpu.memory_space<vmem>>, %arg3: memref<512x1024xbf16, #tpu.memory_space<vmem>>, %arg4: memref<512x768xbf16, #tpu.memory_space<vmem>>, %arg5: memref<1xf32, #tpu.memory_space<smem>>, %arg6: memref<2x16x190xf32, #tpu.memory_space<vmem>>) attributes {dimension_semantics = [], scalar_prefetch = 0 : i64, scratch_operands = 0 : i64, tpu.core_type = #tpu.core_type<tc>} {
    %c0 = arith.constant 0 : index
    %c0_0 = arith.constant 0 : index
    %0 = vector.load %arg0[%c0, %c0_0] : memref<2x8xf32, #tpu.memory_space<vmem>>, vector<2x8xf32>
    %c0_1 = arith.constant 0 : index
    %c0_2 = arith.constant 0 : index
    %1 = vector.load %arg1[%c0_1, %c0_2] : memref<8x768xf32, #tpu.memory_space<vmem>>, vector<8x768xf32>
    %cst = arith.constant dense<0.000000e+00> : vector<2x768xf32>
    %2 = tpu.matmul %0, %1, %cst {dimension_numbers = #tpu.dot_dimension_numbers<[1], [0], [0], [1], [0, 0, 1, 1], [], []>} : vector<2x8xf32>, vector<8x768xf32>, vector<2x768xf32> -> vector<2x768xf32>
    %c0_3 = arith.constant 0 : index
    %c0_4 = arith.constant 0 : index
    %3 = vector.load %arg2[%c0_3, %c0_4] : memref<1x768xf32, #tpu.memory_space<vmem>>, vector<1x768xf32>
    %4 = vector.broadcast %3 : vector<1x768xf32> to vector<2x768xf32>
    %5 = arith.addf %2, %4 : vector<2x768xf32>
    %cst_5 = arith.constant 0.000000e+00 : f32
    %6 = vector.broadcast %cst_5 : f32 to vector<2x768xf32>
    %7 = arith.maximumf %5, %6 : vector<2x768xf32>
    %8 = arith.truncf %7 : vector<2x768xf32> to vector<2x768xbf16>
    %9 = vector.extract_strided_slice %8 {offsets = [0, 0], sizes = [2, 512], strides = [1, 1]} : vector<2x768xbf16> to vector<2x512xbf16>
    %c0_6 = arith.constant 0 : index
    %c0_7 = arith.constant 0 : index
    %10 = vector.load %arg3[%c0_6, %c0_7] : memref<512x1024xbf16, #tpu.memory_space<vmem>>, vector<512x1024xbf16>
    %cst_8 = arith.constant dense<0.000000e+00> : vector<2x1024xf32>
    %11 = tpu.matmul %9, %10, %cst_8 {dimension_numbers = #tpu.dot_dimension_numbers<[1], [0], [0], [1], [0, 0, 1, 1], [], []>} : vector<2x512xbf16>, vector<512x1024xbf16>, vector<2x1024xf32> -> vector<2x1024xf32>
    %12 = vector.extract_strided_slice %8 {offsets = [0, 256], sizes = [2, 512], strides = [1, 1]} : vector<2x768xbf16> to vector<2x512xbf16>
    %c0_9 = arith.constant 0 : index
    %c0_10 = arith.constant 0 : index
    %13 = vector.load %arg4[%c0_9, %c0_10] : memref<512x768xbf16, #tpu.memory_space<vmem>>, vector<512x768xbf16>
    %cst_11 = arith.constant dense<0.000000e+00> : vector<2x768xf32>
    %14 = tpu.matmul %12, %13, %cst_11 {dimension_numbers = #tpu.dot_dimension_numbers<[1], [0], [0], [1], [0, 0, 1, 1], [], []>} : vector<2x512xbf16>, vector<512x768xbf16>, vector<2x768xf32> -> vector<2x768xf32>
    %c0_12 = arith.constant 0 : index
    %15 = memref.load %arg5[%c0_12] : memref<1xf32, #tpu.memory_space<smem>>
    %16 = vector.broadcast %15 : f32 to vector<2x1024xf32>
    %17 = arith.addf %11, %16 : vector<2x1024xf32>
    %cst_13 = arith.constant 0.000000e+00 : f32
    %18 = vector.broadcast %cst_13 : f32 to vector<2x1024xf32>
    %19 = arith.subf %18, %17 : vector<2x1024xf32>
    %20 = math.exp %19 : vector<2x1024xf32>
    %cst_14 = arith.constant 1.000000e+00 : f32
    %21 = vector.broadcast %cst_14 : f32 to vector<2x1024xf32>
    %22 = arith.addf %21, %20 : vector<2x1024xf32>
    %cst_15 = arith.constant 1.000000e+00 : f32
    %23 = vector.broadcast %cst_15 : f32 to vector<2x1024xf32>
    %24 = arith.divf %23, %22 : vector<2x1024xf32>
    %25 = vector.broadcast %15 : f32 to vector<2x768xf32>
    %26 = arith.addf %14, %25 : vector<2x768xf32>
    %cst_16 = arith.constant 0.000000e+00 : f32
    %27 = vector.broadcast %cst_16 : f32 to vector<2x768xf32>
    %28 = arith.subf %27, %26 : vector<2x768xf32>
    %29 = math.exp %28 : vector<2x768xf32>
    %cst_17 = arith.constant 1.000000e+00 : f32
    %30 = vector.broadcast %cst_17 : f32 to vector<2x768xf32>
    %31 = arith.addf %30, %29 : vector<2x768xf32>
    %cst_18 = arith.constant 1.000000e+00 : f32
    %32 = vector.broadcast %cst_18 : f32 to vector<2x768xf32>
    %33 = arith.divf %32, %31 : vector<2x768xf32>
    %34 = vector.extract_strided_slice %24 {offsets = [0, 0], sizes = [2, 190], strides = [1, 1]} : vector<2x1024xf32> to vector<2x190xf32>
    %35 = vector.shape_cast %34 : vector<2x190xf32> to vector<2x1x190xf32>
    %36 = vector.extract_strided_slice %24 {offsets = [0, 256], sizes = [2, 190], strides = [1, 1]} : vector<2x1024xf32> to vector<2x190xf32>
    %37 = vector.shape_cast %36 : vector<2x190xf32> to vector<2x1x190xf32>
    %38 = vector.extract_strided_slice %24 {offsets = [0, 512], sizes = [2, 190], strides = [1, 1]} : vector<2x1024xf32> to vector<2x190xf32>
    %39 = vector.shape_cast %38 : vector<2x190xf32> to vector<2x1x190xf32>
    %40 = vector.extract_strided_slice %24 {offsets = [0, 768], sizes = [2, 190], strides = [1, 1]} : vector<2x1024xf32> to vector<2x190xf32>
    %41 = vector.shape_cast %40 : vector<2x190xf32> to vector<2x1x190xf32>
    %42 = vector.shape_cast %41 : vector<2x1x190xf32> to vector<2x1x190xf32>
    %43 = vector.broadcast %42 : vector<2x1x190xf32> to vector<2x10x190xf32>
    %44 = vector.extract_strided_slice %33 {offsets = [0, 0], sizes = [2, 190], strides = [1, 1]} : vector<2x768xf32> to vector<2x190xf32>
    %45 = vector.shape_cast %44 : vector<2x190xf32> to vector<2x1x190xf32>
    %46 = vector.extract_strided_slice %33 {offsets = [0, 256], sizes = [2, 190], strides = [1, 1]} : vector<2x768xf32> to vector<2x190xf32>
    %47 = vector.shape_cast %46 : vector<2x190xf32> to vector<2x1x190xf32>
    %48 = vector.extract_strided_slice %33 {offsets = [0, 512], sizes = [2, 190], strides = [1, 1]} : vector<2x768xf32> to vector<2x190xf32>
    %49 = vector.shape_cast %48 : vector<2x190xf32> to vector<2x1x190xf32>
    %50 = tpu.concatenate %35, %37, %39, %43, %45, %47, %49 in 1 : vector<2x1x190xf32>, vector<2x1x190xf32>, vector<2x1x190xf32>, vector<2x10x190xf32>, vector<2x1x190xf32>, vector<2x1x190xf32>, vector<2x1x190xf32> -> vector<2x16x190xf32>
    %c0_19 = arith.constant 0 : index
    %c0_20 = arith.constant 0 : index
    %c0_21 = arith.constant 0 : index
    %51 = vector.load %arg6[%c0_19, %c0_20, %c0_21] : memref<2x16x190xf32, #tpu.memory_space<vmem>>, vector<2x16x190xf32>
    tpu.vector_store %arg6[%c0_19, %c0_20, %c0_21], %50 {strides = array<i32>} : memref<2x16x190xf32, #tpu.memory_space<vmem>>, vector<2x16x190xf32>,
    return
  }
}

</mosaic_0001>

<bundles_post_ra>
// kernel: decoder_forward.1
= control target key start
LH: loop header
LB: loop body
LE: loop exit
PB: predicated region body
PF: predicated region fallthrough
CT: control target
= control target key end

     0   :  { %12 = vsyncpa [#allocation4], 0  ;;  %s5228_s0 = inlined_call_operand.vmem [shape: f32[2,8], index: 0, kind: input, shape index: {}]   ;;  %s5229_s1 = inlined_call_operand.hbm [shape: f32[8,768], index: 1, kind: input, shape index: {}]   ;;  %s5230_s2 = inlined_call_operand.hbm [shape: f32[1,768], index: 2, kind: input, shape index: {}]   ;;  %s5231_s3 = inlined_call_operand.hbm [shape: bf16[512,1024], index: 3, kind: input, shape index: {}]   ;;  %s5232_s4 = inlined_call_operand.hbm [shape: bf16[512,768], index: 4, kind: input, shape index: {}]   ;;  %s5233_s5 = inlined_call_operand.<no memory space> [shape: f32[1], index: 5, kind: input, shape index: {}]   ;;  %s5234_s6 = inlined_call_operand.hbm [shape: f32[2,16,190], index: 6, kind: output, shape index: {}]  }
   0x1   :  { %13 = vsyncpa [#allocation7], 0 }
   0x2   :  { %14 = vsyncpa [#allocation10], 0 }
   0x3   :  { %15 = vsyncpa [#allocation5], 0  ;;  %s4982_s21 = smov [#allocation6]   ;;  %s4983_s23 = smov [#allocation3]  }
   0x4   :  { %s34_s22 = sshll.u32 %s4982_s21, 4  ;;  %s24_s24 = sshll.u32 %s4983_s23, 4  ;;  %s35_s22 = int_to_ptr.vmem [resolvable:$true] %s34_s22  ;;  %s25_s24 = int_to_ptr.vmem [resolvable:$true] %s24_s24 }
   0x5   :  { %s4882_s25 = scalar_lea.vmem %s35_s22, 96  ;;  %p4887_p1 = scmp.lt.s32.totalorder %s35_s22, %s35_s22 }
   0x6   :  { %p4883_p0 = scmp.ne.s32.totalorder %s35_s22, %s4882_s25  ;;  %p4888_p2 = scmp.lt.s32.totalorder %s4882_s25, %s4882_s25 }
   0x8   :  { %p4889_p3 = por %p4888_p2, %p4887_p1 }
   0xa   :  { %p4890_p4 = pnand %p4889_p3, %p4883_p0 }
   0xc   :  { %4893 = shalt.err (!%p4890_p4)
}
   0xd   :  { %37 = dma.hbm_to_vmem [thread:$0]  %s5230_s2, 96, %s35_s22, [#allocation7]  }
   0xe   :  { %s4902_s28 = scalar_lea.vmem %s25_s24, 768  ;;  %p4907_p6 = scmp.lt.s32.totalorder %s25_s24, %s25_s24 }
   0xf   :  { %p4903_p5 = scmp.ne.s32.totalorder %s25_s24, %s4902_s28  ;;  %p4908_p7 = scmp.lt.s32.totalorder %s4902_s28, %s4902_s28 }
  0x11   :  { %p4909_p8 = por %p4908_p7, %p4907_p6 }
  0x13   :  { %p4910_p9 = pnand %p4909_p8, %p4903_p5 }
  0x15   :  { %4913 = shalt.err (!%p4910_p9)
}
  0x16   :  { %27 = dma.hbm_to_vmem [thread:$0]  %s5229_s1, 768, %s25_s24, [#allocation4]  }
  0x17   :  { %s4984_s7 = smov [#allocation8]  }
  0x18   :  { %s43_s8 = sshll.u32 %s4984_s7, 4  ;;  %s44_s8 = int_to_ptr.vmem [resolvable:$true] %s43_s8 }
  0x19   :  { %s4922_s9 = scalar_lea.vmem %s44_s8, 32768  ;;  %p4927_p11 = scmp.lt.s32.totalorder %s44_s8, %s44_s8 }
  0x1a   :  { %p4923_p10 = scmp.ne.s32.totalorder %s44_s8, %s4922_s9  ;;  %p4928_p12 = scmp.lt.s32.totalorder %s4922_s9, %s4922_s9 }
  0x1c   :  { %p4929_p13 = por %p4928_p12, %p4927_p11 }
  0x1e   :  { %p4930_p0 = pnand %p4929_p13, %p4923_p10 }
  0x20   :  { %4933 = shalt.err (!%p4930_p0)
}
  0x21   :  { %s4985_s2 = smov 512   ;;  %s4986_s10 = smov 32  }
  0x22   :  { %49 = dma.hbm_to_vmem [thread:$0]  %s5231_s3, 32768, %s44_s8, [#allocation7], %s4985_s2, %s4985_s2, %s4986_s10  }
  0x23   :  { %s4987_s13 = smov [#allocation9]  }
  0x24   :  { %s55_s14 = sshll.u32 %s4987_s13, 4  ;;  %s56_s14 = int_to_ptr.vmem [resolvable:$true] %s55_s14 }
  0x25   :  { %s4942_s1 = scalar_lea.vmem %s56_s14, 24576  ;;  %p4947_p2 = scmp.lt.s32.totalorder %s56_s14, %s56_s14 }
  0x26   :  { %p4943_p1 = scmp.ne.s32.totalorder %s56_s14, %s4942_s1  ;;  %p4948_p3 = scmp.lt.s32.totalorder %s4942_s1, %s4942_s1 }
  0x28   :  { %p4949_p4 = por %p4948_p3, %p4947_p2 }
  0x2a   :  { %p4950_p5 = pnand %p4949_p4, %p4943_p1 }
  0x2c   :  { %4953 = shalt.err (!%p4950_p5)
}
  0x2d   :  { %s4988_s15 = smov 384   ;;  %s4989_s16 = smov 24  }
  0x2e   :  { %61 = dma.hbm_to_vmem [thread:$0]  %s5232_s4, 24576, %s56_s14, [#allocation10], %s4988_s15, %s4988_s15, %s4989_s16  }
  0x2f   :  { %4974 = dma.done.wait [#allocation4], 768  }
  0x30   :  { %4975 = vsyncadd [#allocation4], 4294966528 }
  0x31   :  { %4976 = dma.done.wait [#allocation7], 32864  }
  0x32   :  { %4977 = vsyncadd [#allocation7], 4294934432 }
  0x33   :  { %4978 = dma.done.wait [#allocation10], 24576  }
  0x34   :  { %4979 = vsyncadd [#allocation10], 4294942720  ;;  %v4990_v0 = vmov 0.0   ;;  %v78_v1 = vld [vmem:[#allocation3 + $0x8] sm:$0xff]  ;;  %v80_v2 = vld [vmem:[#allocation3 + $0x18] sm:$0xff]  ;;  %vm115_vm0 = vcmask 64512  }
  0x35   :  { %183 = vmatprep.mubr.f32.mxu0 %v4990_v0  ;;  %254 = vmatprep.mubr.f32.mxu1 %v4990_v0  ;;  %v77_v3 = vld [vmem:[#allocation3] sm:$0xff]  ;;  %v79_v4 = vld [vmem:[#allocation3 + $0x10] sm:$0xff]  ;;  %v82_v6 = vld [vmem:[#allocation3 + $0x28] sm:$0xff]  ;;  %vm4007_vm1 = vcmask 1040384   ;;  %vm4012_vm2 = vcmask 1041408   ;;  %vm4017_vm3 = vcmask 1042432  }
  0x36   :  { %149 = vmatprep.subr.mxu0 %v78_v1  ;;  %220 = vmatprep.subr.mxu1 %v80_v2  ;;  %v76_v5 = vld [vmem:[%s5228_s0] sm:$0x3]  ;;  %v400_v8 = vld [vmem:[#allocation8 + $0x1c0] sm:$0xff]  ;;  %vm4038_vm4 = vcmask 506880   ;;  %vm4022_vm5 = vcmask 1044480   ;;  %vm4027_vm6 = vcmask 1045504  }
  0x37   :  { %150 = vmatpush1.msra.mxu0 %v77_v3  ;;  %221 = vmatpush1.msra.mxu1 %v79_v4  ;;  %v81_v7 = vld [vmem:[#allocation3 + $0x20] sm:$0xff]  ;;  %v404_v9 = vld [vmem:[#allocation8 + $0x1e0] sm:$0xff]  ;;  %vm4032_vm7 = vcmask 1046528  }
  0x38   :  { %4065 = vmatmul.mubr.msk.f32.vlgmr.msra.gmra.mxu0 %vm115_vm0, %v76_v5  ;;  %4066 = vmatmul.mubr.msk.f32.vlgmr.msra.gmra.mxu1 %vm115_vm0, %v76_v5  ;;  %v4124_v10 = vcombine.low %v400_v8, %v404_v9  ;;  %v4125_v11 = vcombine.high %v400_v8, %v404_v9  ;;  %v528_v12 = vld [vmem:[#allocation8 + $0x5c0] sm:$0xff] }
  0x39   :  { %v532_v13 = vld [vmem:[#allocation8 + $0x5e0] sm:$0xff]  ;;  %291 = vmatprep.subr.mxu0 %v82_v6  ;;  %325 = vmatprep.mubr.f32.mxu0 %v4990_v0 }
  0x3a   :  { %v392_v14 = vld [vmem:[#allocation8 + $0x180] sm:$0xff]  ;;  %v4252_v15 = vcombine.low %v528_v12, %v532_v13  ;;  %v4253_v16 = vcombine.high %v528_v12, %v532_v13  ;;  %292 = vmatpush1.msra.mxu0 %v81_v7  ;;  %2074 = vmatprep.subr.bf16.mxu1 %v4125_v11 }
  0x3b   :  { %v396_v17 = vld [vmem:[#allocation8 + $0x1a0] sm:$0xff]  ;;  %2075 = vmatpush1.bf16.msra.mxu1 %v4124_v10 }
  0x3c   :  { %v520_v18 = vld [vmem:[#allocation8 + $0x580] sm:$0xff]  ;;  %v4117_v20 = vcombine.high %v392_v14, %v396_v17  ;;  %2115 = vmatprep.subr.bf16.mxu0 %v4253_v16  ;;  %v4116_v23 = vcombine.low %v392_v14, %v396_v17  ;;  %4067 = vmatmul.mubr.msk.f32.vlgmr.msra.gmra.mxu0 %vm115_vm0, %v76_v5 }
  0x3d   :  { %v524_v19 = vld [vmem:[#allocation8 + $0x5a0] sm:$0xff]  ;;  %2116 = vmatpush1.bf16.msra.mxu0 %v4252_v15 }
  0x3e   :  { %v384_v21 = vld [vmem:[#allocation8 + $0x140] sm:$0xff]  ;;  %v4245_v24 = vcombine.high %v520_v18, %v524_v19  ;;  %2076 = vmatprep.subr.bf16.mxu1 %v4117_v20  ;;  %v4244_v28 = vcombine.low %v520_v18, %v524_v19 }
  0x3f   :  { %v388_v22 = vld [vmem:[#allocation8 + $0x160] sm:$0xff]  ;;  %2077 = vmatpush1.bf16.msra.mxu1 %v4116_v23 }
  0x40   :  { %v512_v25 = vld [vmem:[#allocation8 + $0x540] sm:$0xff]  ;;  %v4109_v27 = vcombine.high %v384_v21, %v388_v22  ;;  %2117 = vmatprep.subr.bf16.mxu0 %v4245_v24  ;;  %v4108_v32 = vcombine.low %v384_v21, %v388_v22 }
  0x41   :  { %v516_v26 = vld [vmem:[#allocation8 + $0x560] sm:$0xff]  ;;  %2118 = vmatpush1.bf16.msra.mxu0 %v4244_v28 }
  0x42   :  { %v376_v29 = vld [vmem:[#allocation8 + $0x100] sm:$0xff]  ;;  %v4237_v31 = vcombine.high %v512_v25, %v516_v26  ;;  %2078 = vmatprep.subr.bf16.mxu1 %v4109_v27  ;;  %v4236_v36 = vcombine.low %v512_v25, %v516_v26 }
  0x43   :  { %v380_v30 = vld [vmem:[#allocation8 + $0x120] sm:$0xff]  ;;  %2079 = vmatpush1.bf16.msra.mxu1 %v4108_v32 }
  0x44   :  { %v504_v33 = vld [vmem:[#allocation8 + $0x500] sm:$0xff]  ;;  %v4101_v35 = vcombine.high %v376_v29, %v380_v30  ;;  %2119 = vmatprep.subr.bf16.mxu0 %v4237_v31  ;;  %v4100_v40 = vcombine.low %v376_v29, %v380_v30 }
  0x45   :  { %v508_v34 = vld [vmem:[#allocation8 + $0x520] sm:$0xff]  ;;  %2120 = vmatpush1.bf16.msra.mxu0 %v4236_v36 }
  0x46   :  { %v368_v37 = vld [vmem:[#allocation8 + $0xc0] sm:$0xff]  ;;  %v4229_v39 = vcombine.high %v504_v33, %v508_v34  ;;  %2080 = vmatprep.subr.bf16.mxu1 %v4101_v35  ;;  %v4228_v44 = vcombine.low %v504_v33, %v508_v34 }
  0x47   :  { %v372_v38 = vld [vmem:[#allocation8 + $0xe0] sm:$0xff]  ;;  %2081 = vmatpush1.bf16.msra.mxu1 %v4100_v40 }
  0x48   :  { %v496_v41 = vld [vmem:[#allocation8 + $0x4c0] sm:$0xff]  ;;  %v4093_v43 = vcombine.high %v368_v37, %v372_v38  ;;  %2121 = vmatprep.subr.bf16.mxu0 %v4229_v39  ;;  %v4092_v48 = vcombine.low %v368_v37, %v372_v38 }
  0x49   :  { %v500_v42 = vld [vmem:[#allocation8 + $0x4e0] sm:$0xff]  ;;  %2122 = vmatpush1.bf16.msra.mxu0 %v4228_v44 }
  0x4a   :  { %v360_v45 = vld [vmem:[#allocation8 + $0x80] sm:$0xff]  ;;  %v4221_v47 = vcombine.high %v496_v41, %v500_v42  ;;  %2082 = vmatprep.subr.bf16.mxu1 %v4093_v43  ;;  %v4220_v52 = vcombine.low %v496_v41, %v500_v42 }
  0x4b   :  { %v364_v46 = vld [vmem:[#allocation8 + $0xa0] sm:$0xff]  ;;  %2083 = vmatpush1.bf16.msra.mxu1 %v4092_v48 }
  0x4c   :  { %v488_v49 = vld [vmem:[#allocation8 + $0x480] sm:$0xff]  ;;  %v4085_v51 = vcombine.high %v360_v45, %v364_v46  ;;  %2123 = vmatprep.subr.bf16.mxu0 %v4221_v47  ;;  %v4084_v58 = vcombine.low %v360_v45, %v364_v46 }
  0x4d   :  { %v492_v50 = vld [vmem:[#allocation8 + $0x4a0] sm:$0xff]  ;;  %2124 = vmatpush1.bf16.msra.mxu0 %v4220_v52 }
  0x4e   :  { %v352_v53 = vld [vmem:[#allocation8 + $0x40] sm:$0xff]  ;;  %v4213_v56 = vcombine.high %v488_v49, %v492_v50  ;;  %2084 = vmatprep.subr.bf16.mxu1 %v4085_v51  ;;  %v4212_v62 = vcombine.low %v488_v49, %v492_v50 }
  0x4f   :  { %v356_v54 = vld [vmem:[#allocation8 + $0x60] sm:$0xff]  ;;  %2085 = vmatpush1.bf16.msra.mxu1 %v4084_v58 }
  0x50   :  { %v480_v55 = vld [vmem:[#allocation8 + $0x440] sm:$0xff]  ;;  %v4077_v61 = vcombine.high %v352_v53, %v356_v54  ;;  %2125 = vmatprep.subr.bf16.mxu0 %v4213_v56  ;;  %v4076_v2 = vcombine.low %v352_v53, %v356_v54 }
  0x51   :  { %v484_v57 = vld [vmem:[#allocation8 + $0x460] sm:$0xff]  ;;  %2126 = vmatpush1.bf16.msra.mxu0 %v4212_v62 }
  0x52   :  { %v344_v59 = vld [vmem:[#allocation8] sm:$0xff]  ;;  %v4205_v1 = vcombine.high %v480_v55, %v484_v57  ;;  %2086 = vmatprep.subr.bf16.mxu1 %v4077_v61  ;;  %v4204_v6 = vcombine.low %v480_v55, %v484_v57 }
  0x53   :  { %v348_v60 = vld [vmem:[#allocation8 + $0x20] sm:$0xff]  ;;  %2087 = vmatpush1.bf16.msra.mxu1 %v4076_v2 }
  0x54   :  { %v472_v63 = vld [vmem:[#allocation8 + $0x400] sm:$0xff]  ;;  %v4069_v5 = vcombine.high %v344_v59, %v348_v60  ;;  %2127 = vmatprep.subr.bf16.mxu0 %v4205_v1  ;;  %v4068_v10 = vcombine.low %v344_v59, %v348_v60 }
  0x55   :  { %v476_v0 = vld [vmem:[#allocation8 + $0x420] sm:$0xff]  ;;  %2128 = vmatpush1.bf16.msra.mxu0 %v4204_v6 }
  0x56   :  { %v464_v3 = vld [vmem:[#allocation8 + $0x3c0] sm:$0xff]  ;;  %v4197_v9 = vcombine.high %v472_v63, %v476_v0  ;;  %2088 = vmatprep.subr.bf16.mxu1 %v4069_v5  ;;  %v4196_v14 = vcombine.low %v472_v63, %v476_v0 }
  0x57   :  { %v468_v4 = vld [vmem:[#allocation8 + $0x3e0] sm:$0xff]  ;;  %2089 = vmatpush1.bf16.msra.mxu1 %v4068_v10  ;;  %v529_v10 = vld [vmem:[#allocation8 + $0x5c8] sm:$0xff] }
  0x58   :  { %v592_v7 = vld [vmem:[#allocation8 + $0x7c0] sm:$0xff]  ;;  %v4189_v13 = vcombine.high %v464_v3, %v468_v4  ;;  %2129 = vmatprep.subr.bf16.mxu0 %v4197_v9  ;;  %v4188_v18 = vcombine.low %v464_v3, %v468_v4  ;;  %v405_v9 = vld [vmem:[#allocation8 + $0x1e8] sm:$0xff] }
  0x59   :  { %v596_v8 = vld [vmem:[#allocation8 + $0x7e0] sm:$0xff]  ;;  %2130 = vmatpush1.bf16.msra.mxu0 %v4196_v14 }
  0x5a   :  { %v456_v11 = vld [vmem:[#allocation8 + $0x380] sm:$0xff]  ;;  %v4317_v17 = vcombine.high %v592_v7, %v596_v8  ;;  %2090 = vmatprep.subr.bf16.mxu1 %v4189_v13  ;;  %v4316_v22 = vcombine.low %v592_v7, %v596_v8  ;;  %v401_v8 = vld [vmem:[#allocation8 + $0x1c8] sm:$0xff] }
  0x5b   :  { %v460_v12 = vld [vmem:[#allocation8 + $0x3a0] sm:$0xff]  ;;  %2091 = vmatpush2.bf16.msra.mxu1 %v4188_v18  ;;  %v4126_v13 = vcombine.low %v401_v8, %v405_v9 }
  0x5c   :  { %v584_v15 = vld [vmem:[#allocation8 + $0x780] sm:$0xff]  ;;  %v4181_v21 = vcombine.high %v456_v11, %v460_v12  ;;  %2131 = vmatprep.subr.bf16.mxu0 %v4317_v17  ;;  %v4180_v26 = vcombine.low %v456_v11, %v460_v12  ;;  %v4127_v11 = vcombine.high %v401_v8, %v405_v9  ;;  %v533_v12 = vld [vmem:[#allocation8 + $0x5e8] sm:$0xff] }
  0x5d   :  { %v588_v16 = vld [vmem:[#allocation8 + $0x7a0] sm:$0xff]  ;;  %2132 = vmatpush2.bf16.msra.mxu0 %v4316_v22  ;;  %v4254_v14 = vcombine.low %v529_v10, %v533_v12  ;;  %v361_v9 = vld [vmem:[#allocation8 + $0x88] sm:$0xff] }
  0x5e   :  { %v448_v19 = vld [vmem:[#allocation8 + $0x340] sm:$0xff]  ;;  %v4309_v25 = vcombine.high %v584_v15, %v588_v16  ;;  %2092 = vmatprep.subr.bf16.mxu1 %v4181_v21  ;;  %v4308_v30 = vcombine.low %v584_v15, %v588_v16  ;;  %v4255_v15 = vcombine.high %v529_v10, %v533_v12  ;;  %v85_v16 = vlaneseq  ;;  %v365_v10 = vld [vmem:[#allocation8 + $0xa8] sm:$0xff] }
  0x5f   :  { %v452_v20 = vld [vmem:[#allocation8 + $0x360] sm:$0xff]  ;;  %2093 = vmatpush2.bf16.msra.mxu1 %v4180_v26  ;;  %v493_v12 = vld [vmem:[#allocation8 + $0x4a8] sm:$0xff] }
  0x60   :  { %v576_v23 = vld [vmem:[#allocation8 + $0x740] sm:$0xff]  ;;  %v4173_v29 = vcombine.high %v448_v19, %v452_v20  ;;  %2133 = vmatprep.subr.bf16.mxu0 %v4309_v25  ;;  %v4172_v34 = vcombine.low %v448_v19, %v452_v20  ;;  %v5048_v17 = vshrl.u32 %v85_v16, 7  ;;  %v83_v20 = vld [vmem:[#allocation6] sm:$0x3f] }
  0x61   :  { %v580_v24 = vld [vmem:[#allocation8 + $0x760] sm:$0xff]  ;;  %2134 = vmatpush2.bf16.msra.mxu0 %v4308_v30 }
  0x62   :  { %v440_v27 = vld [vmem:[#allocation8 + $0x300] sm:$0xff]  ;;  %v4301_v33 = vcombine.high %v576_v23, %v580_v24  ;;  %2094 = vmatprep.subr.bf16.mxu1 %v4173_v29  ;;  %v4300_v38 = vcombine.low %v576_v23, %v580_v24  ;;  %v5051_v18 = vsub.s32 0, %v5048_v17  ;;  %v95_v19 = vsub.s32 2, %v5048_v17 }
  0x63   :  { %v444_v28 = vld [vmem:[#allocation8 + $0x320] sm:$0xff]  ;;  %2095 = vmatpush2.bf16.msra.mxu1 %v4172_v34  ;;  %v5055_v21 = vsub.s32 1, %v5048_v17  ;;  %v99_v22 = vsub.s32 3, %v5048_v17 }
  0x64   :  { %v568_v31 = vld [vmem:[#allocation8 + $0x700] sm:$0xff]  ;;  %v4165_v37 = vcombine.high %v440_v27, %v444_v28  ;;  %2135 = vmatprep.subr.bf16.mxu0 %v4301_v33  ;;  %v4164_v42 = vcombine.low %v440_v27, %v444_v28  ;;  %v88_v23 = vrot.slane %v83_v20, %v5051_v18  ;;  %v96_v24 = vrot.slane %v83_v20, %v95_v19  ;;  %v353_v19 = vld [vmem:[#allocation8 + $0x48] sm:$0xff] }
  0x65   :  { %v572_v32 = vld [vmem:[#allocation8 + $0x720] sm:$0xff]  ;;  %2136 = vmatpush2.bf16.msra.mxu0 %v4300_v38  ;;  %v92_v25 = vrot.slane %v83_v20, %v5055_v21  ;;  %v100_v26 = vrot.slane %v83_v20, %v99_v22  ;;  %v357_v20 = vld [vmem:[#allocation8 + $0x68] sm:$0xff] }
  0x66   :  { %v432_v35 = vld [vmem:[#allocation8 + $0x2c0] sm:$0xff]  ;;  %v4293_v41 = vcombine.high %v568_v31, %v572_v32  ;;  %2096 = vmatprep.subr.bf16.mxu1 %v4165_v37  ;;  %v4292_v46 = vcombine.low %v568_v31, %v572_v32  ;;  %v481_v22 = vld [vmem:[#allocation8 + $0x448] sm:$0xff] }
  0x67   :  { %v436_v36 = vld [vmem:[#allocation8 + $0x2e0] sm:$0xff]  ;;  %2097 = vmatpush2.bf16.msra.mxu1 %v4164_v42  ;;  %v521_v42 = vld [vmem:[#allocation8 + $0x588] sm:$0xff] }
  0x68   :  { %v560_v39 = vld [vmem:[#allocation8 + $0x6c0] sm:$0xff]  ;;  %v4157_v45 = vcombine.high %v432_v35, %v436_v36  ;;  %2137 = vmatprep.subr.bf16.mxu0 %v4293_v41  ;;  %v4156_v50 = vcombine.low %v432_v35, %v436_v36  ;;  %v397_v41 = vld [vmem:[#allocation8 + $0x1a8] sm:$0xff] }
  0x69   :  { %v564_v40 = vld [vmem:[#allocation8 + $0x6e0] sm:$0xff]  ;;  %2138 = vmatpush2.bf16.msra.mxu0 %v4292_v46 }
  0x6a   :  { %v424_v43 = vld [vmem:[#allocation8 + $0x280] sm:$0xff]  ;;  %v4285_v49 = vcombine.high %v560_v39, %v564_v40  ;;  %2098 = vmatprep.subr.bf16.mxu1 %v4157_v45  ;;  %v4284_v52 = vcombine.low %v560_v39, %v564_v40  ;;  %v393_v39 = vld [vmem:[#allocation8 + $0x188] sm:$0xff] }
  0x6b   :  { %v428_v44 = vld [vmem:[#allocation8 + $0x2a0] sm:$0xff]  ;;  %2099 = vmatpush2.bf16.msra.mxu1 %v4156_v50  ;;  %v389_v50 = vld [vmem:[#allocation8 + $0x168] sm:$0xff] }
  0x6c   :  { %v552_v47 = vld [vmem:[#allocation8 + $0x680] sm:$0xff]  ;;  %v4149_v51 = vcombine.high %v424_v43, %v428_v44  ;;  %2139 = vmatprep.subr.bf16.mxu0 %v4285_v49  ;;  %v4148_v54 = vcombine.low %v424_v43, %v428_v44  ;;  %v525_v43 = vld [vmem:[#allocation8 + $0x5a8] sm:$0xff] }
  0x6d   :  { %v556_v48 = vld [vmem:[#allocation8 + $0x6a0] sm:$0xff]  ;;  %2140 = vmatpush2.bf16.msra.mxu0 %v4284_v52  ;;  %v4247_v49 = vcombine.high %v521_v42, %v525_v43  ;;  %v517_v52 = vld [vmem:[#allocation8 + $0x568] sm:$0xff] }
  0x6e   :  { %v4277_v53 = vcombine.high %v552_v47, %v556_v48  ;;  %2100 = vmatprep.subr.bf16.mxu1 %v4149_v51  ;;  %v4276_v55 = vcombine.low %v552_v47, %v556_v48  ;;  %v416_v56 = vld [vmem:[#allocation8 + $0x240] sm:$0xff]  ;;  %v385_v47 = vld [vmem:[#allocation8 + $0x148] sm:$0xff]  ;;  %v4119_v48 = vcombine.high %v393_v39, %v397_v41 }
  0x6f   :  { %2101 = vmatpush2.bf16.msra.mxu1 %v4148_v54  ;;  %v420_v57 = vld [vmem:[#allocation8 + $0x260] sm:$0xff]  ;;  %v513_v51 = vld [vmem:[#allocation8 + $0x548] sm:$0xff]  ;;  %v4246_v54 = vcombine.low %v521_v42, %v525_v43 }
  0x70   :  { %2141 = vmatprep.subr.bf16.mxu0 %v4277_v53  ;;  %v544_v58 = vld [vmem:[#allocation8 + $0x640] sm:$0xff]  ;;  %v4141_v59 = vcombine.high %v416_v56, %v420_v57  ;;  %v4140_v61 = vcombine.low %v416_v56, %v420_v57  ;;  %v4118_v53 = vcombine.low %v393_v39, %v397_v41  ;;  %v4239_v56 = vcombine.high %v513_v51, %v517_v52  ;;  %v377_v57 = vld [vmem:[#allocation8 + $0x108] sm:$0xff] }
  0x71   :  { %2142 = vmatpush2.bf16.msra.mxu0 %v4276_v55  ;;  %v548_v60 = vld [vmem:[#allocation8 + $0x660] sm:$0xff]  ;;  %v4111_v55 = vcombine.high %v385_v47, %v389_v50  ;;  %v597_v39 = vld [vmem:[#allocation8 + $0x7e8] sm:$0xff] }
  0x72   :  { %v4268_v62 = vcombine.low %v544_v58, %v548_v60  ;;  %v4269_v63 = vcombine.high %v544_v58, %v548_v60  ;;  %2102 = vmatprep.subr.bf16.mxu1 %v4141_v59  ;;  %v408_v0 = vld [vmem:[#allocation8 + $0x200] sm:$0xff]  ;;  %v381_v58 = vld [vmem:[#allocation8 + $0x128] sm:$0xff] }
  0x73   :  { %2103 = vmatpush2.bf16.msra.mxu1 %v4140_v61  ;;  %v412_v1 = vld [vmem:[#allocation8 + $0x220] sm:$0xff]  ;;  %v505_v59 = vld [vmem:[#allocation8 + $0x508] sm:$0xff]  ;;  %v4110_v61 = vcombine.low %v385_v47, %v389_v50 }
  0x74   :  { %2143 = vmatprep.subr.bf16.mxu0 %v4269_v63  ;;  %v536_v2 = vld [vmem:[#allocation8 + $0x600] sm:$0xff]  ;;  %v4133_v3 = vcombine.high %v408_v0, %v412_v1  ;;  %v4132_v5 = vcombine.low %v408_v0, %v412_v1  ;;  %v509_v60 = vld [vmem:[#allocation8 + $0x528] sm:$0xff]  ;;  %v4103_v63 = vcombine.high %v377_v57, %v381_v58 }
  0x75   :  { %2144 = vmatpush2.bf16.msra.mxu0 %v4268_v62  ;;  %v540_v4 = vld [vmem:[#allocation8 + $0x620] sm:$0xff]  ;;  %v4238_v62 = vcombine.low %v513_v51, %v517_v52  ;;  %v4231_v0 = vcombine.high %v505_v59, %v509_v60  ;;  %v369_v1 = vld [vmem:[#allocation8 + $0xc8] sm:$0xff] }
  0x76   :  { %v4260_v6 = vcombine.low %v536_v2, %v540_v4  ;;  %v4261_v7 = vcombine.high %v536_v2, %v540_v4  ;;  %2104 = vmatprep.subr.bf16.mxu1 %v4133_v3  ;;  %v373_v2 = vld [vmem:[#allocation8 + $0xe8] sm:$0xff] }
  0x77   :  { %2105 = vmatpush2.bf16.msra.mxu1 %v4132_v5  ;;  %v497_v3 = vld [vmem:[#allocation8 + $0x4c8] sm:$0xff]  ;;  %v4102_v5 = vcombine.low %v377_v57, %v381_v58 }
  0x78   :  { %2145 = vmatprep.subr.bf16.mxu0 %v4261_v7  ;;  %2156 = vmatprep.subr.bf16.mxu1 %v4127_v11  ;;  %v501_v4 = vld [vmem:[#allocation8 + $0x4e8] sm:$0xff]  ;;  %v4095_v7 = vcombine.high %v369_v1, %v373_v2 }
  0x79   :  { %2146 = vmatpush2.bf16.msra.mxu0 %v4260_v6  ;;  %v4230_v6 = vcombine.low %v505_v59, %v509_v60  ;;  %v4223_v8 = vcombine.high %v497_v3, %v501_v4  ;;  %v489_v11 = vld [vmem:[#allocation8 + $0x488] sm:$0xff] }
  0x7a   :  { %2197 = vmatprep.subr.bf16.mxu0 %v4255_v15  ;;  %v4087_v15 = vcombine.high %v361_v9, %v365_v10  ;;  %v4215_v16 = vcombine.high %v489_v11, %v493_v12  ;;  %v585_v50 = vld [vmem:[#allocation8 + $0x788] sm:$0xff] }
  0x7b   :  { %v589_v51 = vld [vmem:[#allocation8 + $0x7a8] sm:$0xff] }
  0x7c   :  { %v453_v57 = vld [vmem:[#allocation8 + $0x368] sm:$0xff] }
  0x7d   :  { %v577_v58 = vld [vmem:[#allocation8 + $0x748] sm:$0xff] }
  0x7e   :  { %v581_v59 = vld [vmem:[#allocation8 + $0x768] sm:$0xff] }
  0xf8   :  { %v185_v27 = vpop.f32.mrf.mxu0  ;;  %v256_v28 = vpop.f32.mrf.mxu1 }
  0xf9   :  { %v186_v29 = vadd.f32 %v185_v27, %v88_v23  ;;  %v257_v30 = vadd.f32 %v256_v28, %v96_v24  ;;  %v485_v23 = vld [vmem:[#allocation8 + $0x468] sm:$0xff]  ;;  %v4086_v24 = vcombine.low %v361_v9, %v365_v10 }
  0xfa   :  { %v187_v31 = vpop.f32.mrf.mxu0  ;;  %v258_v32 = vpop.f32.mrf.mxu1  ;;  %v4207_v27 = vcombine.high %v481_v22, %v485_v23  ;;  %v345_v28 = vld [vmem:[#allocation8 + $0x8] sm:$0xff] }
  0xfb   :  { %v334_v33 = vmax.f32 %v257_v30, 0.0  ;;  %v188_v34 = vadd.f32 %v187_v31, %v92_v25  ;;  %v259_v35 = vadd.f32 %v258_v32, %v100_v26  ;;  %v332_v36 = vmax.f32 %v186_v29, 0.0  ;;  %v349_v29 = vld [vmem:[#allocation8 + $0x28] sm:$0xff] }
  0xfc   :  { %v4214_v25 = vcombine.low %v489_v11, %v493_v12  ;;  %v4079_v26 = vcombine.high %v353_v19, %v357_v20  ;;  %v473_v30 = vld [vmem:[#allocation8 + $0x408] sm:$0xff]  ;;  %v4078_v32 = vcombine.low %v353_v19, %v357_v20  ;;  %v4070_v41 = vcombine.low %v345_v28, %v349_v29 }
  0xfd   :  { %v333_v37 = vmax.f32 %v188_v34, 0.0  ;;  %v335_v38 = vmax.f32 %v259_v35, 0.0  ;;  %v5060_v40 = vpack.c.bf16 %v334_v33, %v334_v33  ;;  %v5066_v46 = vpack.c.bf16 %v332_v36, %v332_v36  ;;  %v477_v31 = vld [vmem:[#allocation8 + $0x428] sm:$0xff] }
  0xfe   :  { %v4206_v33 = vcombine.low %v481_v22, %v485_v23  ;;  %v4071_v34 = vcombine.high %v345_v28, %v349_v29  ;;  %v4199_v35 = vcombine.high %v473_v30, %v477_v31  ;;  %v465_v36 = vld [vmem:[#allocation8 + $0x3c8] sm:$0xff]  ;;  %v4198_v42 = vcombine.low %v473_v30, %v477_v31 }
  0xff   :  { %v5062_v44 = vpack.c.bf16 %v333_v37, %v333_v37  ;;  %v5064_v45 = vpack.c.bf16 %v335_v38, %v335_v38  ;;  %v469_v37 = vld [vmem:[#allocation8 + $0x3e8] sm:$0xff] }
 0x100   :  { %v593_v38 = vld [vmem:[#allocation8 + $0x7c8] sm:$0xff]  ;;  %v4191_v43 = vcombine.high %v465_v36, %v469_v37  ;;  %v4190_v52 = vcombine.low %v465_v36, %v469_v37 }
 0x101   :  { %2106 = vmatprep.mubr.bf16.mxu1 %v5062_v44  ;;  %2147 = vmatprep.mubr.bf16.mxu0 %v5064_v45  ;;  %v4319_v47 = vcombine.high %v593_v38, %v597_v39  ;;  %v437_v9 = vld [vmem:[#allocation8 + $0x2e8] sm:$0xff] }
 0x102   :  { %2107 = vmatmul.mubr.bf16.vlgmr.msra.gmra.mxu1 %v5066_v46  ;;  %2148 = vmatmul.mubr.bf16.vlgmr.msra.gmra.mxu0 %v5060_v40  ;;  %v561_v10 = vld [vmem:[#allocation8 + $0x6c8] sm:$0xff] }
 0x103   :  { %2157 = vmatpush1.bf16.msra.mxu1 %v4126_v13  ;;  %2198 = vmatpush1.bf16.msra.mxu0 %v4254_v14  ;;  %v4094_v13 = vcombine.low %v369_v1, %v373_v2  ;;  %v4222_v14 = vcombine.low %v497_v3, %v501_v4  ;;  %v445_v1 = vld [vmem:[#allocation8 + $0x328] sm:$0xff] }
 0x104   :  { %2188 = vmatprep.mubr.bf16.mxu1 %v5062_v44  ;;  %2229 = vmatprep.mubr.bf16.mxu0 %v5064_v45  ;;  %v569_v2 = vld [vmem:[#allocation8 + $0x708] sm:$0xff] }
 0x105   :  { %2158 = vmatprep.subr.bf16.mxu1 %v4119_v48  ;;  %2199 = vmatprep.subr.bf16.mxu0 %v4247_v49  ;;  %v457_v48 = vld [vmem:[#allocation8 + $0x388] sm:$0xff] }
 0x106   :  { %v461_v49 = vld [vmem:[#allocation8 + $0x3a8] sm:$0xff] }
 0x107   :  { %2159 = vmatpush1.bf16.msra.mxu1 %v4118_v53  ;;  %2200 = vmatpush1.bf16.msra.mxu0 %v4246_v54  ;;  %v4318_v53 = vcombine.low %v593_v38, %v597_v39  ;;  %v4183_v54 = vcombine.high %v457_v48, %v461_v49  ;;  %v4182_v60 = vcombine.low %v457_v48, %v461_v49  ;;  %v573_v3 = vld [vmem:[#allocation8 + $0x728] sm:$0xff]  ;;  %v406_v48 = vld [vmem:[#allocation8 + $0x1f0] sm:$0xff] }
 0x108   :  { %2160 = vmatprep.subr.bf16.mxu1 %v4111_v55  ;;  %2201 = vmatprep.subr.bf16.mxu0 %v4239_v56  ;;  %v4311_v55 = vcombine.high %v585_v50, %v589_v51  ;;  %v449_v56 = vld [vmem:[#allocation8 + $0x348] sm:$0xff]  ;;  %v530_v49 = vld [vmem:[#allocation8 + $0x5d0] sm:$0xff] }
 0x109   :  { %v4174_v4 = vcombine.low %v449_v56, %v453_v57  ;;  %v565_v11 = vld [vmem:[#allocation8 + $0x6e8] sm:$0xff] }
 0x10a   :  { %v429_v19 = vld [vmem:[#allocation8 + $0x2a8] sm:$0xff] }
 0x10b   :  { %2161 = vmatpush1.bf16.msra.mxu1 %v4110_v61  ;;  %2202 = vmatpush1.bf16.msra.mxu0 %v4238_v62  ;;  %v4310_v61 = vcombine.low %v585_v50, %v589_v51  ;;  %v4175_v62 = vcombine.high %v449_v56, %v453_v57  ;;  %v553_v20 = vld [vmem:[#allocation8 + $0x688] sm:$0xff]  ;;  %v534_v50 = vld [vmem:[#allocation8 + $0x5f0] sm:$0xff] }
 0x10c   :  { %2162 = vmatprep.subr.bf16.mxu1 %v4103_v63  ;;  %2203 = vmatprep.subr.bf16.mxu0 %v4231_v0  ;;  %v4303_v63 = vcombine.high %v577_v58, %v581_v59  ;;  %v441_v0 = vld [vmem:[#allocation8 + $0x308] sm:$0xff]  ;;  %v398_v56 = vld [vmem:[#allocation8 + $0x1b0] sm:$0xff] }
 0x10d   :  { %v4166_v12 = vcombine.low %v441_v0, %v445_v1  ;;  %v557_v22 = vld [vmem:[#allocation8 + $0x6a8] sm:$0xff]  ;;  %v522_v57 = vld [vmem:[#allocation8 + $0x590] sm:$0xff] }
 0x10e   :  { %v421_v28 = vld [vmem:[#allocation8 + $0x268] sm:$0xff] }
 0x10f   :  { %2163 = vmatpush1.bf16.msra.mxu1 %v4102_v5  ;;  %2204 = vmatpush1.bf16.msra.mxu0 %v4230_v6  ;;  %v4302_v5 = vcombine.low %v577_v58, %v581_v59  ;;  %v4167_v6 = vcombine.high %v441_v0, %v445_v1  ;;  %v545_v29 = vld [vmem:[#allocation8 + $0x648] sm:$0xff]  ;;  %v526_v58 = vld [vmem:[#allocation8 + $0x5b0] sm:$0xff] }
 0x110   :  { %2164 = vmatprep.subr.bf16.mxu1 %v4095_v7  ;;  %2205 = vmatprep.subr.bf16.mxu0 %v4223_v8  ;;  %v4295_v7 = vcombine.high %v569_v2, %v573_v3  ;;  %v433_v8 = vld [vmem:[#allocation8 + $0x2c8] sm:$0xff]  ;;  %v390_v0 = vld [vmem:[#allocation8 + $0x170] sm:$0xff] }
 0x111   :  { %v4158_v23 = vcombine.low %v433_v8, %v437_v9  ;;  %v549_v30 = vld [vmem:[#allocation8 + $0x668] sm:$0xff]  ;;  %v514_v1 = vld [vmem:[#allocation8 + $0x550] sm:$0xff] }
 0x112   :  { %v413_v36 = vld [vmem:[#allocation8 + $0x228] sm:$0xff] }
 0x113   :  { %2165 = vmatpush1.bf16.msra.mxu1 %v4094_v13  ;;  %2206 = vmatpush1.bf16.msra.mxu0 %v4222_v14  ;;  %v4294_v13 = vcombine.low %v569_v2, %v573_v3  ;;  %v4159_v14 = vcombine.high %v433_v8, %v437_v9  ;;  %v537_v37 = vld [vmem:[#allocation8 + $0x608] sm:$0xff]  ;;  %v518_v2 = vld [vmem:[#allocation8 + $0x570] sm:$0xff] }
 0x114   :  { %2166 = vmatprep.subr.bf16.mxu1 %v4087_v15  ;;  %2207 = vmatprep.subr.bf16.mxu0 %v4215_v16  ;;  %v4287_v15 = vcombine.high %v561_v10, %v565_v11  ;;  %v425_v16 = vld [vmem:[#allocation8 + $0x288] sm:$0xff]  ;;  %v382_v8 = vld [vmem:[#allocation8 + $0x130] sm:$0xff] }
 0x115   :  { %v4150_v31 = vcombine.low %v425_v16, %v429_v19  ;;  %v541_v38 = vld [vmem:[#allocation8 + $0x628] sm:$0xff]  ;;  %v506_v9 = vld [vmem:[#allocation8 + $0x510] sm:$0xff] }
 0x117   :  { %2167 = vmatpush1.bf16.msra.mxu1 %v4086_v24  ;;  %2208 = vmatpush1.bf16.msra.mxu0 %v4214_v25  ;;  %v4286_v24 = vcombine.low %v561_v10, %v565_v11  ;;  %v4151_v25 = vcombine.high %v425_v16, %v429_v19  ;;  %v510_v10 = vld [vmem:[#allocation8 + $0x530] sm:$0xff] }
 0x118   :  { %2168 = vmatprep.subr.bf16.mxu1 %v4079_v26  ;;  %2209 = vmatprep.subr.bf16.mxu0 %v4207_v27  ;;  %v4279_v26 = vcombine.high %v553_v20, %v557_v22  ;;  %v417_v27 = vld [vmem:[#allocation8 + $0x248] sm:$0xff]  ;;  %v374_v16 = vld [vmem:[#allocation8 + $0xf0] sm:$0xff] }
 0x119   :  { %v4142_v39 = vcombine.low %v417_v27, %v421_v28  ;;  %v498_v19 = vld [vmem:[#allocation8 + $0x4d0] sm:$0xff] }
 0x11b   :  { %2169 = vmatpush1.bf16.msra.mxu1 %v4078_v32  ;;  %2210 = vmatpush1.bf16.msra.mxu0 %v4206_v33  ;;  %v4278_v32 = vcombine.low %v553_v20, %v557_v22  ;;  %v4143_v33 = vcombine.high %v417_v27, %v421_v28  ;;  %v502_v20 = vld [vmem:[#allocation8 + $0x4f0] sm:$0xff] }
 0x11c   :  { %2170 = vmatprep.subr.bf16.mxu1 %v4071_v34  ;;  %2211 = vmatprep.subr.bf16.mxu0 %v4199_v35  ;;  %v4271_v34 = vcombine.high %v545_v29, %v549_v30  ;;  %v409_v35 = vld [vmem:[#allocation8 + $0x208] sm:$0xff]  ;;  %v366_v27 = vld [vmem:[#allocation8 + $0xb0] sm:$0xff] }
 0x11d   :  { %v4134_v51 = vcombine.low %v409_v35, %v413_v36  ;;  %v490_v28 = vld [vmem:[#allocation8 + $0x490] sm:$0xff] }
 0x11f   :  { %2171 = vmatpush1.bf16.msra.mxu1 %v4070_v41  ;;  %2212 = vmatpush1.bf16.msra.mxu0 %v4198_v42  ;;  %v4270_v41 = vcombine.low %v545_v29, %v549_v30  ;;  %v4135_v42 = vcombine.high %v409_v35, %v413_v36  ;;  %v494_v29 = vld [vmem:[#allocation8 + $0x4b0] sm:$0xff] }
 0x120   :  { %2172 = vmatprep.subr.bf16.mxu1 %v4191_v43  ;;  %2213 = vmatprep.subr.bf16.mxu0 %v4319_v47  ;;  %v4263_v43 = vcombine.high %v537_v37, %v541_v38  ;;  %v402_v47 = vld [vmem:[#allocation8 + $0x1d0] sm:$0xff] }
 0x121   :  { %v4128_v59 = vcombine.low %v402_v47, %v406_v48  ;;  %v358_v35 = vld [vmem:[#allocation8 + $0x70] sm:$0xff] }
 0x122   :  { %v482_v36 = vld [vmem:[#allocation8 + $0x450] sm:$0xff] }
 0x123   :  { %2173 = vmatpush2.bf16.msra.mxu1 %v4190_v52  ;;  %2214 = vmatpush2.bf16.msra.mxu0 %v4318_v53  ;;  %v4262_v52 = vcombine.low %v537_v37, %v541_v38  ;;  %v4129_v53 = vcombine.high %v402_v47, %v406_v48  ;;  %v486_v37 = vld [vmem:[#allocation8 + $0x470] sm:$0xff] }
 0x124   :  { %2174 = vmatprep.subr.bf16.mxu1 %v4183_v54  ;;  %2215 = vmatprep.subr.bf16.mxu0 %v4311_v55  ;;  %v4257_v54 = vcombine.high %v530_v49, %v534_v50  ;;  %v394_v55 = vld [vmem:[#allocation8 + $0x190] sm:$0xff] }
 0x125   :  { %v4120_v3 = vcombine.low %v394_v55, %v398_v56  ;;  %v350_v47 = vld [vmem:[#allocation8 + $0x30] sm:$0xff] }
 0x126   :  { %v474_v48 = vld [vmem:[#allocation8 + $0x410] sm:$0xff] }
 0x127   :  { %2175 = vmatpush2.bf16.msra.mxu1 %v4182_v60  ;;  %2216 = vmatpush2.bf16.msra.mxu0 %v4310_v61  ;;  %v4256_v60 = vcombine.low %v530_v49, %v534_v50  ;;  %v4121_v61 = vcombine.high %v394_v55, %v398_v56  ;;  %v478_v49 = vld [vmem:[#allocation8 + $0x430] sm:$0xff] }
 0x128   :  { %2176 = vmatprep.subr.bf16.mxu1 %v4175_v62  ;;  %2217 = vmatprep.subr.bf16.mxu0 %v4303_v63  ;;  %v4249_v62 = vcombine.high %v522_v57, %v526_v58  ;;  %v386_v63 = vld [vmem:[#allocation8 + $0x150] sm:$0xff] }
 0x129   :  { %v4112_v11 = vcombine.low %v386_v63, %v390_v0  ;;  %v470_v55 = vld [vmem:[#allocation8 + $0x3f0] sm:$0xff] }
 0x12a   :  { %v594_v56 = vld [vmem:[#allocation8 + $0x7d0] sm:$0xff] }
 0x12b   :  { %2177 = vmatpush2.bf16.msra.mxu1 %v4174_v4  ;;  %2218 = vmatpush2.bf16.msra.mxu0 %v4302_v5  ;;  %v4248_v4 = vcombine.low %v522_v57, %v526_v58  ;;  %v4113_v5 = vcombine.high %v386_v63, %v390_v0  ;;  %v598_v57 = vld [vmem:[#allocation8 + $0x7f0] sm:$0xff] }
 0x12c   :  { %2178 = vmatprep.subr.bf16.mxu1 %v4167_v6  ;;  %2219 = vmatprep.subr.bf16.mxu0 %v4295_v7  ;;  %v4241_v6 = vcombine.high %v514_v1, %v518_v2  ;;  %v378_v7 = vld [vmem:[#allocation8 + $0x110] sm:$0xff] }
 0x12d   :  { %v4104_v22 = vcombine.low %v378_v7, %v382_v8  ;;  %v462_v63 = vld [vmem:[#allocation8 + $0x3b0] sm:$0xff] }
 0x12e   :  { %v586_v0 = vld [vmem:[#allocation8 + $0x790] sm:$0xff] }
 0x12f   :  { %2179 = vmatpush2.bf16.msra.mxu1 %v4166_v12  ;;  %2220 = vmatpush2.bf16.msra.mxu0 %v4294_v13  ;;  %v4240_v12 = vcombine.low %v514_v1, %v518_v2  ;;  %v4105_v13 = vcombine.high %v378_v7, %v382_v8  ;;  %v590_v1 = vld [vmem:[#allocation8 + $0x7b0] sm:$0xff] }
 0x130   :  { %2180 = vmatprep.subr.bf16.mxu1 %v4159_v14  ;;  %2221 = vmatprep.subr.bf16.mxu0 %v4287_v15  ;;  %v4233_v14 = vcombine.high %v506_v9, %v510_v10  ;;  %v370_v15 = vld [vmem:[#allocation8 + $0xd0] sm:$0xff] }
 0x131   :  { %v4096_v30 = vcombine.low %v370_v15, %v374_v16  ;;  %v454_v7 = vld [vmem:[#allocation8 + $0x370] sm:$0xff] }
 0x132   :  { %v578_v8 = vld [vmem:[#allocation8 + $0x750] sm:$0xff] }
 0x133   :  { %2181 = vmatpush2.bf16.msra.mxu1 %v4158_v23  ;;  %2222 = vmatpush2.bf16.msra.mxu0 %v4286_v24  ;;  %v4232_v23 = vcombine.low %v506_v9, %v510_v10  ;;  %v4097_v24 = vcombine.high %v370_v15, %v374_v16  ;;  %v582_v9 = vld [vmem:[#allocation8 + $0x770] sm:$0xff] }
 0x134   :  { %2182 = vmatprep.subr.bf16.mxu1 %v4151_v25  ;;  %2223 = vmatprep.subr.bf16.mxu0 %v4279_v26  ;;  %v4225_v25 = vcombine.high %v498_v19, %v502_v20  ;;  %v362_v26 = vld [vmem:[#allocation8 + $0x90] sm:$0xff] }
 0x135   :  { %v4088_v38 = vcombine.low %v362_v26, %v366_v27  ;;  %v446_v15 = vld [vmem:[#allocation8 + $0x330] sm:$0xff] }
 0x136   :  { %v570_v16 = vld [vmem:[#allocation8 + $0x710] sm:$0xff] }
 0x137   :  { %2183 = vmatpush2.bf16.msra.mxu1 %v4150_v31  ;;  %2224 = vmatpush2.bf16.msra.mxu0 %v4278_v32  ;;  %v4224_v31 = vcombine.low %v498_v19, %v502_v20  ;;  %v4089_v32 = vcombine.high %v362_v26, %v366_v27  ;;  %v574_v19 = vld [vmem:[#allocation8 + $0x730] sm:$0xff] }
 0x138   :  { %2184 = vmatprep.subr.bf16.mxu1 %v4143_v33  ;;  %2225 = vmatprep.subr.bf16.mxu0 %v4271_v34  ;;  %v4217_v33 = vcombine.high %v490_v28, %v494_v29  ;;  %v354_v34 = vld [vmem:[#allocation8 + $0x50] sm:$0xff] }
 0x139   :  { %v4080_v50 = vcombine.low %v354_v34, %v358_v35  ;;  %v438_v26 = vld [vmem:[#allocation8 + $0x2f0] sm:$0xff] }
 0x13a   :  { %v562_v27 = vld [vmem:[#allocation8 + $0x6d0] sm:$0xff] }
 0x13b   :  { %2185 = vmatpush2.bf16.msra.mxu1 %v4142_v39  ;;  %2226 = vmatpush2.bf16.msra.mxu0 %v4270_v41  ;;  %v4216_v39 = vcombine.low %v490_v28, %v494_v29  ;;  %v4081_v41 = vcombine.high %v354_v34, %v358_v35  ;;  %v566_v28 = vld [vmem:[#allocation8 + $0x6f0] sm:$0xff] }
 0x13c   :  { %2186 = vmatprep.subr.bf16.mxu1 %v4135_v42  ;;  %2227 = vmatprep.subr.bf16.mxu0 %v4263_v43  ;;  %v4209_v42 = vcombine.high %v482_v36, %v486_v37  ;;  %v346_v43 = vld [vmem:[#allocation8 + $0x10] sm:$0xff] }
 0x13d   :  { %v4072_v58 = vcombine.low %v346_v43, %v350_v47  ;;  %v430_v34 = vld [vmem:[#allocation8 + $0x2b0] sm:$0xff] }
 0x13e   :  { %v554_v35 = vld [vmem:[#allocation8 + $0x690] sm:$0xff] }
 0x13f   :  { %2187 = vmatpush2.bf16.msra.mxu1 %v4134_v51  ;;  %2228 = vmatpush2.bf16.msra.mxu0 %v4262_v52  ;;  %v4208_v51 = vcombine.low %v482_v36, %v486_v37  ;;  %v4073_v52 = vcombine.high %v346_v43, %v350_v47  ;;  %v558_v36 = vld [vmem:[#allocation8 + $0x6b0] sm:$0xff] }
 0x140   :  { %2238 = vmatprep.subr.bf16.mxu1 %v4129_v53  ;;  %2279 = vmatprep.subr.bf16.mxu0 %v4257_v54  ;;  %v4201_v53 = vcombine.high %v474_v48, %v478_v49  ;;  %v466_v54 = vld [vmem:[#allocation8 + $0x3d0] sm:$0xff] }
 0x141   :  { %v4192_v2 = vcombine.low %v466_v54, %v470_v55  ;;  %v422_v43 = vld [vmem:[#allocation8 + $0x270] sm:$0xff] }
 0x142   :  { %2189 = vmatmul.mubr.bf16.vlgmr.msra.gmra.mxu1 %v5066_v46  ;;  %2230 = vmatmul.mubr.bf16.vlgmr.msra.gmra.mxu0 %v5060_v40  ;;  %v546_v47 = vld [vmem:[#allocation8 + $0x650] sm:$0xff] }
 0x143   :  { %2239 = vmatpush1.bf16.msra.mxu1 %v4128_v59  ;;  %2270 = vmatprep.mubr.bf16.mxu1 %v5062_v44  ;;  %v4200_v59 = vcombine.low %v474_v48, %v478_v49  ;;  %v550_v48 = vld [vmem:[#allocation8 + $0x670] sm:$0xff] }
 0x144   :  { %2280 = vmatpush1.bf16.msra.mxu0 %v4256_v60  ;;  %2311 = vmatprep.mubr.bf16.mxu0 %v5064_v45  ;;  %v4193_v60 = vcombine.high %v466_v54, %v470_v55  ;;  %v414_v54 = vld [vmem:[#allocation8 + $0x230] sm:$0xff] }
 0x145   :  { %2240 = vmatprep.subr.bf16.mxu1 %v4121_v61  ;;  %2281 = vmatprep.subr.bf16.mxu0 %v4249_v62  ;;  %v4321_v61 = vcombine.high %v594_v56, %v598_v57  ;;  %v458_v62 = vld [vmem:[#allocation8 + $0x390] sm:$0xff] }
 0x146   :  { %v4184_v10 = vcombine.low %v458_v62, %v462_v63  ;;  %v538_v55 = vld [vmem:[#allocation8 + $0x610] sm:$0xff] }
 0x147   :  { %2241 = vmatpush1.bf16.msra.mxu1 %v4120_v3  ;;  %v4320_v3 = vcombine.low %v594_v56, %v598_v57  ;;  %v542_v56 = vld [vmem:[#allocation8 + $0x630] sm:$0xff] }
 0x148   :  { %2282 = vmatpush1.bf16.msra.mxu0 %v4248_v4  ;;  %2242 = vmatprep.subr.bf16.mxu1 %v4113_v5  ;;  %v4185_v4 = vcombine.high %v458_v62, %v462_v63  ;;  %v4313_v5 = vcombine.high %v586_v0, %v590_v1  ;;  %v407_v62 = vld [vmem:[#allocation8 + $0x1f8] sm:$0xff] }
 0x149   :  { %2283 = vmatprep.subr.bf16.mxu0 %v4241_v6  ;;  %v450_v6 = vld [vmem:[#allocation8 + $0x350] sm:$0xff]  ;;  %v531_v63 = vld [vmem:[#allocation8 + $0x5d8] sm:$0xff] }
 0x14a   :  { %v4176_v20 = vcombine.low %v450_v6, %v454_v7 }
 0x14b   :  { %2243 = vmatpush1.bf16.msra.mxu1 %v4112_v11  ;;  %v4312_v11 = vcombine.low %v586_v0, %v590_v1  ;;  %v535_v0 = vld [vmem:[#allocation8 + $0x5f8] sm:$0xff] }
 0x14c   :  { %2284 = vmatpush1.bf16.msra.mxu0 %v4240_v12  ;;  %2244 = vmatprep.subr.bf16.mxu1 %v4105_v13  ;;  %v4177_v12 = vcombine.high %v450_v6, %v454_v7  ;;  %v4305_v13 = vcombine.high %v578_v8, %v582_v9  ;;  %v399_v6 = vld [vmem:[#allocation8 + $0x1b8] sm:$0xff] }
 0x14d   :  { %2285 = vmatprep.subr.bf16.mxu0 %v4233_v14  ;;  %v442_v14 = vld [vmem:[#allocation8 + $0x310] sm:$0xff] }
 0x14e   :  { %v4168_v29 = vcombine.low %v442_v14, %v446_v15 }
 0x14f   :  { %2245 = vmatpush1.bf16.msra.mxu1 %v4104_v22  ;;  %v4304_v22 = vcombine.low %v578_v8, %v582_v9  ;;  %v523_v8 = vld [vmem:[#allocation8 + $0x598] sm:$0xff] }
 0x150   :  { %2286 = vmatpush1.bf16.msra.mxu0 %v4232_v23  ;;  %2246 = vmatprep.subr.bf16.mxu1 %v4097_v24  ;;  %v4169_v23 = vcombine.high %v442_v14, %v446_v15  ;;  %v4297_v24 = vcombine.high %v570_v16, %v574_v19  ;;  %v527_v9 = vld [vmem:[#allocation8 + $0x5b8] sm:$0xff] }
 0x151   :  { %2287 = vmatprep.subr.bf16.mxu0 %v4225_v25  ;;  %v434_v25 = vld [vmem:[#allocation8 + $0x2d0] sm:$0xff]  ;;  %v4251_v14 = vcombine.high %v523_v8, %v527_v9  ;;  %v515_v15 = vld [vmem:[#allocation8 + $0x558] sm:$0xff] }
 0x152   :  { %v4160_v37 = vcombine.low %v434_v25, %v438_v26 }
 0x153   :  { %2247 = vmatpush1.bf16.msra.mxu1 %v4096_v30  ;;  %v4296_v30 = vcombine.low %v570_v16, %v574_v19  ;;  %v519_v16 = vld [vmem:[#allocation8 + $0x578] sm:$0xff] }
 0x154   :  { %2288 = vmatpush1.bf16.msra.mxu0 %v4224_v31  ;;  %2248 = vmatprep.subr.bf16.mxu1 %v4089_v32  ;;  %v4161_v31 = vcombine.high %v434_v25, %v438_v26  ;;  %v4289_v32 = vcombine.high %v562_v27, %v566_v28  ;;  %v383_v25 = vld [vmem:[#allocation8 + $0x138] sm:$0xff] }
 0x155   :  { %2289 = vmatprep.subr.bf16.mxu0 %v4217_v33  ;;  %v426_v33 = vld [vmem:[#allocation8 + $0x290] sm:$0xff]  ;;  %v507_v26 = vld [vmem:[#allocation8 + $0x518] sm:$0xff] }
 0x156   :  { %v4152_v49 = vcombine.low %v426_v33, %v430_v34 }
 0x157   :  { %2249 = vmatpush1.bf16.msra.mxu1 %v4088_v38  ;;  %v4288_v38 = vcombine.low %v562_v27, %v566_v28  ;;  %v511_v27 = vld [vmem:[#allocation8 + $0x538] sm:$0xff] }
 0x158   :  { %2290 = vmatpush1.bf16.msra.mxu0 %v4216_v39  ;;  %2250 = vmatprep.subr.bf16.mxu1 %v4081_v41  ;;  %v4153_v39 = vcombine.high %v426_v33, %v430_v34  ;;  %v4281_v41 = vcombine.high %v554_v35, %v558_v36  ;;  %v499_v33 = vld [vmem:[#allocation8 + $0x4d8] sm:$0xff] }
 0x159   :  { %2291 = vmatprep.subr.bf16.mxu0 %v4209_v42  ;;  %v418_v42 = vld [vmem:[#allocation8 + $0x250] sm:$0xff]  ;;  %v503_v34 = vld [vmem:[#allocation8 + $0x4f8] sm:$0xff] }
 0x15a   :  { %v4144_v57 = vcombine.low %v418_v42, %v422_v43 }
 0x15b   :  { %2251 = vmatpush1.bf16.msra.mxu1 %v4080_v50  ;;  %v4280_v50 = vcombine.low %v554_v35, %v558_v36  ;;  %v4234_v36 = vcombine.low %v507_v26, %v511_v27 }
 0x15c   :  { %2292 = vmatpush1.bf16.msra.mxu0 %v4208_v51  ;;  %2252 = vmatprep.subr.bf16.mxu1 %v4073_v52  ;;  %v4145_v51 = vcombine.high %v418_v42, %v422_v43  ;;  %v4273_v52 = vcombine.high %v546_v47, %v550_v48  ;;  %v491_v42 = vld [vmem:[#allocation8 + $0x498] sm:$0xff] }
 0x15d   :  { %2293 = vmatprep.subr.bf16.mxu0 %v4201_v53  ;;  %v410_v53 = vld [vmem:[#allocation8 + $0x210] sm:$0xff]  ;;  %v495_v43 = vld [vmem:[#allocation8 + $0x4b8] sm:$0xff] }
 0x15e   :  { %v4136_v1 = vcombine.low %v410_v53, %v414_v54 }
 0x15f   :  { %2253 = vmatpush1.bf16.msra.mxu1 %v4072_v58  ;;  %v4272_v58 = vcombine.low %v546_v47, %v550_v48  ;;  %v4226_v48 = vcombine.low %v499_v33, %v503_v34 }
 0x160   :  { %2294 = vmatpush1.bf16.msra.mxu0 %v4200_v59  ;;  %2254 = vmatprep.subr.bf16.mxu1 %v4193_v60  ;;  %v4137_v59 = vcombine.high %v410_v53, %v414_v54  ;;  %v4265_v60 = vcombine.high %v538_v55, %v542_v56  ;;  %v483_v53 = vld [vmem:[#allocation8 + $0x458] sm:$0xff] }
 0x161   :  { %2295 = vmatprep.subr.bf16.mxu0 %v4321_v61  ;;  %v403_v61 = vld [vmem:[#allocation8 + $0x1d8] sm:$0xff] }
 0x162   :  { %v4130_v7 = vcombine.low %v403_v61, %v407_v62  ;;  %v487_v54 = vld [vmem:[#allocation8 + $0x478] sm:$0xff] }
 0x163   :  { %2255 = vmatpush2.bf16.msra.mxu1 %v4192_v2  ;;  %v4264_v2 = vcombine.low %v538_v55, %v542_v56  ;;  %v4218_v56 = vcombine.low %v491_v42, %v495_v43 }
 0x164   :  { %2296 = vmatpush2.bf16.msra.mxu0 %v4320_v3  ;;  %2256 = vmatprep.subr.bf16.mxu1 %v4185_v4  ;;  %v4131_v3 = vcombine.high %v403_v61, %v407_v62  ;;  %v4259_v4 = vcombine.high %v531_v63, %v535_v0  ;;  %v475_v61 = vld [vmem:[#allocation8 + $0x418] sm:$0xff] }
 0x165   :  { %2297 = vmatprep.subr.bf16.mxu0 %v4313_v5  ;;  %v395_v5 = vld [vmem:[#allocation8 + $0x198] sm:$0xff] }
 0x166   :  { %v4122_v19 = vcombine.low %v395_v5, %v399_v6  ;;  %v479_v62 = vld [vmem:[#allocation8 + $0x438] sm:$0xff] }
 0x167   :  { %2257 = vmatpush2.bf16.msra.mxu1 %v4184_v10  ;;  %v4258_v10 = vcombine.low %v531_v63, %v535_v0  ;;  %v4210_v0 = vcombine.low %v483_v53, %v487_v54 }
 0x168   :  { %2298 = vmatpush2.bf16.msra.mxu0 %v4312_v11  ;;  %2258 = vmatprep.subr.bf16.mxu1 %v4177_v12  ;;  %v4123_v11 = vcombine.high %v395_v5, %v399_v6  ;;  %v387_v12 = vld [vmem:[#allocation8 + $0x158] sm:$0xff] }
 0x169   :  { %2299 = vmatprep.subr.bf16.mxu0 %v4305_v13  ;;  %v391_v13 = vld [vmem:[#allocation8 + $0x178] sm:$0xff] }
 0x16a   :  { %v4114_v28 = vcombine.low %v387_v12, %v391_v13  ;;  %v595_v5 = vld [vmem:[#allocation8 + $0x7d8] sm:$0xff] }
 0x16b   :  { %2259 = vmatpush2.bf16.msra.mxu1 %v4176_v20  ;;  %v4250_v20 = vcombine.low %v523_v8, %v527_v9  ;;  %v599_v6 = vld [vmem:[#allocation8 + $0x7f8] sm:$0xff]  ;;  %v4202_v8 = vcombine.low %v475_v61, %v479_v62 }
 0x16c   :  { %2300 = vmatpush2.bf16.msra.mxu0 %v4304_v22  ;;  %2260 = vmatprep.subr.bf16.mxu1 %v4169_v23  ;;  %v4115_v22 = vcombine.high %v387_v12, %v391_v13  ;;  %v4243_v23 = vcombine.high %v515_v15, %v519_v16  ;;  %v463_v12 = vld [vmem:[#allocation8 + $0x3b8] sm:$0xff] }
 0x16d   :  { %2301 = vmatprep.subr.bf16.mxu0 %v4297_v24  ;;  %v379_v24 = vld [vmem:[#allocation8 + $0x118] sm:$0xff] }
 0x16e   :  { %v4106_v35 = vcombine.low %v379_v24, %v383_v25  ;;  %v587_v13 = vld [vmem:[#allocation8 + $0x798] sm:$0xff] }
 0x16f   :  { %2261 = vmatpush2.bf16.msra.mxu1 %v4168_v29  ;;  %v4242_v29 = vcombine.low %v515_v15, %v519_v16  ;;  %v4322_v16 = vcombine.low %v595_v5, %v599_v6 }
 0x170   :  { %2302 = vmatpush2.bf16.msra.mxu0 %v4296_v30  ;;  %2262 = vmatprep.subr.bf16.mxu1 %v4161_v31  ;;  %v4107_v30 = vcombine.high %v379_v24, %v383_v25  ;;  %v371_v31 = vld [vmem:[#allocation8 + $0xd8] sm:$0xff] }
 0x171   :  { %2303 = vmatprep.subr.bf16.mxu0 %v4289_v32  ;;  %v375_v32 = vld [vmem:[#allocation8 + $0xf8] sm:$0xff] }
 0x172   :  { %v4098_v47 = vcombine.low %v371_v31, %v375_v32  ;;  %v579_v24 = vld [vmem:[#allocation8 + $0x758] sm:$0xff] }
 0x173   :  { %2263 = vmatpush2.bf16.msra.mxu1 %v4160_v37  ;;  %v4099_v37 = vcombine.high %v371_v31, %v375_v32  ;;  %v583_v25 = vld [vmem:[#allocation8 + $0x778] sm:$0xff] }
 0x174   :  { %2304 = vmatpush2.bf16.msra.mxu0 %v4288_v38  ;;  %2264 = vmatprep.subr.bf16.mxu1 %v4153_v39  ;;  %v4227_v38 = vcombine.high %v499_v33, %v503_v34  ;;  %v363_v39 = vld [vmem:[#allocation8 + $0x98] sm:$0xff]  ;;  %v4306_v34 = vcombine.low %v579_v24, %v583_v25 }
 0x175   :  { %2305 = vmatprep.subr.bf16.mxu0 %v4281_v41  ;;  %v367_v41 = vld [vmem:[#allocation8 + $0xb8] sm:$0xff] }
 0x176   :  { %v4090_v55 = vcombine.low %v363_v39, %v367_v41  ;;  %v571_v31 = vld [vmem:[#allocation8 + $0x718] sm:$0xff] }
 0x177   :  { %2265 = vmatpush2.bf16.msra.mxu1 %v4152_v49  ;;  %v4091_v49 = vcombine.high %v363_v39, %v367_v41  ;;  %v575_v32 = vld [vmem:[#allocation8 + $0x738] sm:$0xff] }
 0x178   :  { %2306 = vmatpush2.bf16.msra.mxu0 %v4280_v50  ;;  %2266 = vmatprep.subr.bf16.mxu1 %v4145_v51  ;;  %v4219_v50 = vcombine.high %v491_v42, %v495_v43  ;;  %v355_v51 = vld [vmem:[#allocation8 + $0x58] sm:$0xff]  ;;  %v4298_v43 = vcombine.low %v571_v31, %v575_v32 }
 0x179   :  { %2307 = vmatprep.subr.bf16.mxu0 %v4273_v52  ;;  %v359_v52 = vld [vmem:[#allocation8 + $0x78] sm:$0xff] }
 0x17a   :  { %v4082_v63 = vcombine.low %v355_v51, %v359_v52  ;;  %v563_v39 = vld [vmem:[#allocation8 + $0x6d8] sm:$0xff] }
 0x17b   :  { %2267 = vmatpush2.bf16.msra.mxu1 %v4144_v57  ;;  %v4083_v57 = vcombine.high %v355_v51, %v359_v52  ;;  %v567_v41 = vld [vmem:[#allocation8 + $0x6f8] sm:$0xff] }
 0x17c   :  { %2308 = vmatpush2.bf16.msra.mxu0 %v4272_v58  ;;  %2268 = vmatprep.subr.bf16.mxu1 %v4137_v59  ;;  %v4211_v58 = vcombine.high %v483_v53, %v487_v54  ;;  %v347_v59 = vld [vmem:[#allocation8 + $0x18] sm:$0xff]  ;;  %v4290_v54 = vcombine.low %v563_v39, %v567_v41 }
 0x17d   :  { %2309 = vmatprep.subr.bf16.mxu0 %v4265_v60  ;;  %v351_v60 = vld [vmem:[#allocation8 + $0x38] sm:$0xff] }
 0x17e   :  { %v555_v51 = vld [vmem:[#allocation8 + $0x698] sm:$0xff] }
 0x17f   :  { %2269 = vmatpush2.bf16.msra.mxu1 %v4136_v1  ;;  %v4075_v1 = vcombine.high %v347_v59, %v351_v60  ;;  %v559_v52 = vld [vmem:[#allocation8 + $0x6b8] sm:$0xff] }
 0x180   :  { %2310 = vmatpush2.bf16.msra.mxu0 %v4264_v2  ;;  %2320 = vmatprep.subr.bf16.mxu1 %v4131_v3  ;;  %v4203_v2 = vcombine.high %v475_v61, %v479_v62  ;;  %v467_v3 = vld [vmem:[#allocation8 + $0x3d8] sm:$0xff]  ;;  %v107_v61 = vsub.s32 5, %v5048_v17 }
 0x181   :  { %2361 = vmatprep.subr.bf16.mxu0 %v4259_v4  ;;  %v471_v4 = vld [vmem:[#allocation8 + $0x3f8] sm:$0xff] }
 0x182   :  { %2271 = vmatmul.mubr.bf16.vlgmr.msra.gmra.mxu1 %v5066_v46  ;;  %v4195_v9 = vcombine.high %v467_v3, %v471_v4  ;;  %v4194_v15 = vcombine.low %v467_v3, %v471_v4  ;;  %v411_v3 = vld [vmem:[#allocation8 + $0x218] sm:$0xff] }
 0x183   :  { %2312 = vmatmul.mubr.bf16.vlgmr.msra.gmra.mxu0 %v5060_v40  ;;  %2321 = vmatpush1.bf16.msra.mxu1 %v4130_v7  ;;  %v4074_v7 = vcombine.low %v347_v59, %v351_v60  ;;  %v547_v59 = vld [vmem:[#allocation8 + $0x658] sm:$0xff] }
 0x184   :  { %2352 = vmatprep.mubr.bf16.mxu1 %v5062_v44  ;;  %2362 = vmatpush1.bf16.msra.mxu0 %v4258_v10  ;;  %v4235_v44 = vcombine.high %v507_v26, %v511_v27  ;;  %v4323_v10 = vcombine.high %v595_v5, %v599_v6  ;;  %v551_v60 = vld [vmem:[#allocation8 + $0x678] sm:$0xff] }
 0x185   :  { %2393 = vmatprep.mubr.bf16.mxu0 %v5064_v45  ;;  %2322 = vmatprep.subr.bf16.mxu1 %v4123_v11  ;;  %v459_v11 = vld [vmem:[#allocation8 + $0x398] sm:$0xff] }
 0x186   :  { %2363 = vmatprep.subr.bf16.mxu0 %v4251_v14  ;;  %v591_v14 = vld [vmem:[#allocation8 + $0x7b8] sm:$0xff]  ;;  %v4186_v26 = vcombine.low %v459_v11, %v463_v12 }
 0x187   :  { %2323 = vmatpush1.bf16.msra.mxu1 %v4122_v19  ;;  %v4187_v19 = vcombine.high %v459_v11, %v463_v12  ;;  %v4314_v27 = vcombine.low %v587_v13, %v591_v14  ;;  %v415_v4 = vld [vmem:[#allocation8 + $0x238] sm:$0xff]  ;;  %v4274_v11 = vcombine.low %v547_v59, %v551_v60 }
 0x188   :  { %2364 = vmatpush1.bf16.msra.mxu0 %v4250_v20  ;;  %2324 = vmatprep.subr.bf16.mxu1 %v4115_v22  ;;  %v4315_v20 = vcombine.high %v587_v13, %v591_v14  ;;  %v451_v22 = vld [vmem:[#allocation8 + $0x358] sm:$0xff]  ;;  %v4139_v12 = vcombine.high %v411_v3, %v415_v4 }
 0x189   :  { %2365 = vmatprep.subr.bf16.mxu0 %v4243_v23  ;;  %v455_v23 = vld [vmem:[#allocation8 + $0x378] sm:$0xff] }
 0x18a   :  { %v4178_v33 = vcombine.low %v451_v22, %v455_v23  ;;  %v539_v5 = vld [vmem:[#allocation8 + $0x618] sm:$0xff] }
 0x18b   :  { %2325 = vmatpush1.bf16.msra.mxu1 %v4114_v28  ;;  %v4179_v28 = vcombine.high %v451_v22, %v455_v23  ;;  %v543_v6 = vld [vmem:[#allocation8 + $0x638] sm:$0xff]  ;;  %v4529_v23 = vld [vmem:[#allocation9 + $0x150] ss:$24 sps:$4 sm:$0xff]  }
 0x18c   :  { %2366 = vmatpush1.bf16.msra.mxu0 %v4242_v29  ;;  %2326 = vmatprep.subr.bf16.mxu1 %v4107_v30  ;;  %v4307_v29 = vcombine.high %v579_v24, %v583_v25  ;;  %v443_v30 = vld [vmem:[#allocation8 + $0x318] sm:$0xff]  ;;  %v4267_v13 = vcombine.high %v539_v5, %v543_v6  ;;  %v4532_v24 = vld [vmem:[#allocation9 + $0x450] ss:$24 sps:$4 sm:$0xff]   ;;  %v5091_v25 = vstv %s5233_s5  ;;  %s4992_s5 = smov [#allocation11]  }
 0x18d   :  { %2367 = vmatprep.subr.bf16.mxu0 %v4235_v44  ;;  %v447_v44 = vld [vmem:[#allocation8 + $0x338] sm:$0xff]  ;;  %s4051_s20 = sshll.u32 %s4992_s5, 4  ;;  %s4052_s20 = int_to_ptr.vmem [resolvable:$true] %s4051_s20 }
 0x18e   :  { %v4170_v42 = vcombine.low %v443_v30, %v447_v44  ;;  %s4954_s21 = scalar_lea.vmem %s4052_s20, 1024  ;;  %p4959_p7 = scmp.lt.s32.totalorder %s4052_s20, %s4052_s20 }
 0x18f   :  { %2327 = vmatpush1.bf16.msra.mxu1 %v4106_v35  ;;  %v4171_v35 = vcombine.high %v443_v30, %v447_v44  ;;  %p4955_p6 = scmp.ne.s32.totalorder %s4052_s20, %s4954_s21  ;;  %p4960_p8 = scmp.lt.s32.totalorder %s4954_s21, %s4954_s21 }
 0x190   :  { %2368 = vmatpush1.bf16.msra.mxu0 %v4234_v36  ;;  %2328 = vmatprep.subr.bf16.mxu1 %v4099_v37  ;;  %v4299_v36 = vcombine.high %v571_v31, %v575_v32  ;;  %v435_v37 = vld [vmem:[#allocation8 + $0x2d8] sm:$0xff] }
 0x191   :  { %2369 = vmatprep.subr.bf16.mxu0 %v4227_v38  ;;  %v439_v38 = vld [vmem:[#allocation8 + $0x2f8] sm:$0xff]  ;;  %p4961_p9 = por %p4960_p8, %p4959_p7 }
 0x192   :  { %v4162_v53 = vcombine.low %v435_v37, %v439_v38  ;;  %v4535_v31 = vld [vmem:[#allocation9 + $0x120] ss:$24 sps:$4 sm:$0xff]  }
 0x193   :  { %2329 = vmatpush1.bf16.msra.mxu1 %v4098_v47  ;;  %v4163_v47 = vcombine.high %v435_v37, %v439_v38  ;;  %v4546_v37 = vld [vmem:[#allocation9 + $0x3f4] ss:$24 sps:$4 sm:$0xff]   ;;  %p4962_p10 = pnand %p4961_p9, %p4955_p6 }
 0x194   :  { %2370 = vmatpush1.bf16.msra.mxu0 %v4226_v48  ;;  %2330 = vmatprep.subr.bf16.mxu1 %v4091_v49  ;;  %v4291_v48 = vcombine.high %v563_v39, %v567_v41  ;;  %v427_v49 = vld [vmem:[#allocation8 + $0x298] sm:$0xff] }
 0x195   :  { %2371 = vmatprep.subr.bf16.mxu0 %v4219_v50  ;;  %v431_v50 = vld [vmem:[#allocation8 + $0x2b8] sm:$0xff] }
 0x196   :  { %v4154_v62 = vcombine.low %v427_v49, %v431_v50 }
 0x197   :  { %2331 = vmatpush1.bf16.msra.mxu1 %v4090_v55  ;;  %v4155_v55 = vcombine.high %v427_v49, %v431_v50  ;;  %v4544_v49 = vld [vmem:[#allocation9 + $0x3f0] ss:$24 sps:$4 sm:$0xff]   ;;  %v4549_v50 = vld [vmem:[#allocation9 + $0xc4] ss:$24 sps:$4 sm:$0xff]  }
 0x198   :  { %2372 = vmatpush1.bf16.msra.mxu0 %v4218_v56  ;;  %2332 = vmatprep.subr.bf16.mxu1 %v4083_v57  ;;  %v4283_v56 = vcombine.high %v555_v51, %v559_v52  ;;  %v419_v57 = vld [vmem:[#allocation8 + $0x258] sm:$0xff] }
 0x199   :  { %2373 = vmatprep.subr.bf16.mxu0 %v4211_v58  ;;  %v423_v58 = vld [vmem:[#allocation8 + $0x278] sm:$0xff] }
 0x19b   :  { %2333 = vmatpush1.bf16.msra.mxu1 %v4082_v63  ;;  %v5083_v63 = vpop.f32.mrf.mxu0 }
 0x19c   :  { %2374 = vmatpush1.bf16.msra.mxu0 %v4210_v0  ;;  %2334 = vmatprep.subr.bf16.mxu1 %v4075_v1  ;;  %v4282_v0 = vcombine.low %v555_v51, %v559_v52  ;;  %v4147_v1 = vcombine.high %v419_v57, %v423_v58 }
 0x19d   :  { %2375 = vmatprep.subr.bf16.mxu0 %v4203_v2  ;;  %v4275_v2 = vcombine.high %v547_v59, %v551_v60  ;;  %v4553_v59 = vld [vmem:[#allocation9 + $0x90] ss:$24 sps:$4 sm:$0xff]  }
 0x19e   :  { %v4556_v60 = vld [vmem:[#allocation9 + $0x390] ss:$24 sps:$4 sm:$0xff]  }
 0x19f   :  { %2335 = vmatpush1.bf16.msra.mxu1 %v4074_v7  ;;  %v5085_v7 = vld [vmem:[#allocation6] sm:$0x3f] }
 0x1a0   :  { %2376 = vmatpush1.bf16.msra.mxu0 %v4202_v8  ;;  %2336 = vmatprep.subr.bf16.mxu1 %v4195_v9  ;;  %v108_v8 = vrot.slane %v5085_v7, %v107_v61  ;;  %v4146_v9 = vcombine.low %v419_v57, %v423_v58  ;;  %v4555_v57 = vld [vmem:[#allocation9 + $0x94] ss:$24 sps:$4 sm:$0xff]   ;;  %v4561_v61 = vld [vmem:[#allocation9 + $0x64] ss:$24 sps:$4 sm:$0xff]  }
 0x1a1   :  { %2377 = vmatprep.subr.bf16.mxu0 %v4323_v10  ;;  %v329_v10 = vpop.f32.mrf.mxu0  ;;  %v4558_v58 = vld [vmem:[#allocation9 + $0x394] ss:$24 sps:$4 sm:$0xff]  }
 0x1a2   :  { %v330_v14 = vadd.f32 %v329_v10, %v108_v8  ;;  %v4573_v8 = vld [vmem:[#allocation9 + $0x4] ss:$24 sps:$4 sm:$0xff]  }
 0x1a3   :  { %2337 = vmatpush2.bf16.msra.mxu1 %v4194_v15  ;;  %v4138_v15 = vcombine.low %v411_v3, %v415_v4  ;;  %v4570_v3 = vld [vmem:[#allocation9 + $0x334] ss:$24 sps:$4 sm:$0xff]   ;;  %v4565_v4 = vld [vmem:[#allocation9 + $0x30] ss:$24 sps:$4 sm:$0xff]   ;;  %v4576_v10 = vld [vmem:[#allocation9 + $0x304] ss:$24 sps:$4 sm:$0xff]  }
 0x1a4   :  { %2378 = vmatpush2.bf16.msra.mxu0 %v4322_v16  ;;  %2338 = vmatprep.subr.bf16.mxu1 %v4187_v19  ;;  %v4266_v16 = vcombine.low %v539_v5, %v543_v6  ;;  %v4531_v19 = vld [vmem:[#allocation9 + $0x154] ss:$24 sps:$4 sm:$0xff]   ;;  %v337_v22 = vmax.f32 %v330_v14, 0.0  ;;  %v4568_v6 = vld [vmem:[#allocation9 + $0x330] ss:$24 sps:$4 sm:$0xff]  }
 0x1a5   :  { %2379 = vmatprep.subr.bf16.mxu0 %v4315_v20  ;;  %v4534_v20 = vld [vmem:[#allocation9 + $0x454] ss:$24 sps:$4 sm:$0xff]   ;;  %v4574_v14 = vld [vmem:[#allocation9 + $0x300] ss:$24 sps:$4 sm:$0xff]  }
 0x1a6   :  { %v5094_v30 = vpack.c.bf16 %v337_v22, %v337_v22  ;;  %v4585_v22 = vld [vmem:[#allocation9 + $0x2a4] ss:$24 sps:$4 sm:$0xff]  }
 0x1a7   :  { %2339 = vmatpush2.bf16.msra.mxu1 %v4186_v26  ;;  %v4537_v26 = vld [vmem:[#allocation9 + $0x124] ss:$24 sps:$4 sm:$0xff]  }
 0x1a8   :  { %2380 = vmatpush2.bf16.msra.mxu0 %v4314_v27  ;;  %2340 = vmatprep.subr.bf16.mxu1 %v4179_v28 }
 0x1a9   :  { %2381 = vmatprep.subr.bf16.mxu0 %v4307_v29  ;;  %v4540_v29 = vld [vmem:[#allocation9 + $0x424] ss:$24 sps:$4 sm:$0xff]  }
 0x1ab   :  { %2341 = vmatpush2.bf16.msra.mxu1 %v4178_v33 }
 0x1ac   :  { %2382 = vmatpush2.bf16.msra.mxu0 %v4306_v34  ;;  %2342 = vmatprep.subr.bf16.mxu1 %v4171_v35  ;;  %v4538_v34 = vld [vmem:[#allocation9 + $0x420] ss:$24 sps:$4 sm:$0xff]   ;;  %v4543_v35 = vld [vmem:[#allocation9 + $0xf4] ss:$24 sps:$4 sm:$0xff]  }
 0x1ad   :  { %2383 = vmatprep.subr.bf16.mxu0 %v4299_v36 }
 0x1af   :  { %2343 = vmatpush2.bf16.msra.mxu1 %v4170_v42 }
 0x1b0   :  { %2384 = vmatpush2.bf16.msra.mxu0 %v4298_v43  ;;  %2344 = vmatprep.subr.bf16.mxu1 %v4163_v47  ;;  %v4541_v43 = vld [vmem:[#allocation9 + $0xf0] ss:$24 sps:$4 sm:$0xff]  }
 0x1b1   :  { %2385 = vmatprep.subr.bf16.mxu0 %v4291_v48 }
 0x1b3   :  { %2345 = vmatpush2.bf16.msra.mxu1 %v4162_v53  ;;  %v4552_v53 = vld [vmem:[#allocation9 + $0x3c4] ss:$24 sps:$4 sm:$0xff]  }
 0x1b4   :  { %2386 = vmatpush2.bf16.msra.mxu0 %v4290_v54  ;;  %2346 = vmatprep.subr.bf16.mxu1 %v4155_v55  ;;  %v4547_v55 = vld [vmem:[#allocation9 + $0xc0] ss:$24 sps:$4 sm:$0xff]  }
 0x1b5   :  { %2387 = vmatprep.subr.bf16.mxu0 %v4283_v56  ;;  %v4550_v56 = vld [vmem:[#allocation9 + $0x3c0] ss:$24 sps:$4 sm:$0xff]  }
 0x1b7   :  { %2347 = vmatpush2.bf16.msra.mxu1 %v4154_v62  ;;  %v4564_v62 = vld [vmem:[#allocation9 + $0x364] ss:$24 sps:$4 sm:$0xff]  }
 0x1b8   :  { %2388 = vmatpush2.bf16.msra.mxu0 %v4282_v0  ;;  %2348 = vmatprep.subr.bf16.mxu1 %v4147_v1  ;;  %v4559_v0 = vld [vmem:[#allocation9 + $0x60] ss:$24 sps:$4 sm:$0xff]  }
 0x1b9   :  { %2389 = vmatprep.subr.bf16.mxu0 %v4275_v2  ;;  %v4562_v1 = vld [vmem:[#allocation9 + $0x360] ss:$24 sps:$4 sm:$0xff]   ;;  %v4567_v2 = vld [vmem:[#allocation9 + $0x34] ss:$24 sps:$4 sm:$0xff]  }
 0x1bb   :  { %2349 = vmatpush2.bf16.msra.mxu1 %v4146_v9 }
 0x1bc   :  { %2390 = vmatpush2.bf16.msra.mxu0 %v4274_v11  ;;  %2350 = vmatprep.subr.bf16.mxu1 %v4139_v12 }
 0x1bd   :  { %2391 = vmatprep.subr.bf16.mxu0 %v4267_v13  ;;  %v4571_v13 = vld [vmem:[#allocation9] ss:$24 sps:$4 sm:$0xff]  }
 0x1bf   :  { %2351 = vmatpush2.bf16.msra.mxu1 %v4138_v15  ;;  %v4579_v15 = vld [vmem:[#allocation9 + $0x2d4] ss:$24 sps:$4 sm:$0xff]  }
 0x1c0   :  { %2392 = vmatpush2.bf16.msra.mxu0 %v4266_v16  ;;  %3410 = vmatprep.subr.bf16.mxu1 %v4531_v19  ;;  %v4582_v16 = vld [vmem:[#allocation9 + $0x5d4] ss:$24 sps:$4 sm:$0xff]   ;;  %v4577_v19 = vld [vmem:[#allocation9 + $0x2d0] ss:$24 sps:$4 sm:$0xff]  }
 0x1c1   :  { %3451 = vmatprep.subr.bf16.mxu0 %v4534_v20  ;;  %v4580_v20 = vld [vmem:[#allocation9 + $0x5d0] ss:$24 sps:$4 sm:$0xff]  }
 0x1c2   :  { %2353 = vmatmul.mubr.bf16.vlgmr.msra.gmra.mxu1 %v5066_v46  ;;  %v2108_v27 = vpop.f32.mrf.mxu1  ;;  %v2149_v28 = vpop.f32.mrf.mxu0 }
 0x1c3   :  { %2394 = vmatmul.mubr.bf16.vlgmr.msra.gmra.mxu0 %v5060_v40  ;;  %v2109_v44 = vadd.f32 %v2108_v27, %v5091_v25  ;;  %3411 = vmatpush1.bf16.msra.mxu1 %v4529_v23  ;;  %v4588_v23 = vld [vmem:[#allocation9 + $0x5a4] ss:$24 sps:$4 sm:$0xff]   ;;  %v4591_v27 = vld [vmem:[#allocation9 + $0x274] ss:$24 sps:$4 sm:$0xff]  }
 0x1c4   :  { %3442 = vmatprep.mubr.bf16.mxu1 %v5064_v45  ;;  %3452 = vmatpush1.bf16.msra.mxu0 %v4532_v24  ;;  %v2110_v32 = vpop.f32.mrf.mxu1  ;;  %v2151_v33 = vpop.f32.mrf.mxu0  ;;  %v4583_v24 = vld [vmem:[#allocation9 + $0x2a0] ss:$24 sps:$4 sm:$0xff]  }
 0x1c5   :  { %v2150_v36 = vadd.f32 %v2149_v28, %v2109_v44  ;;  %3483 = vmatprep.mubr.bf16.mxu0 %v5094_v30  ;;  %v2111_v46 = vadd.f32 %v2110_v32, %v5091_v25  ;;  %3412 = vmatprep.subr.bf16.mxu1 %v4537_v26  ;;  %v4586_v26 = vld [vmem:[#allocation9 + $0x5a0] ss:$24 sps:$4 sm:$0xff]   ;;  %v4594_v28 = vld [vmem:[#allocation9 + $0x574] ss:$24 sps:$4 sm:$0xff]   ;;  %v4592_v44 = vld [vmem:[#allocation9 + $0x570] ss:$24 sps:$4 sm:$0xff]  }
 0x1c6   :  { %3453 = vmatprep.subr.bf16.mxu0 %v4540_v29  ;;  %v2112_v38 = vpop.f32.mrf.mxu1  ;;  %v2153_v39 = vpop.f32.mrf.mxu0  ;;  %v4589_v29 = vld [vmem:[#allocation9 + $0x270] ss:$24 sps:$4 sm:$0xff]  }
 0x1c7   :  { %v2402_v41 = vsub.f32 0.0, %v2150_v36  ;;  %v2152_v42 = vadd.f32 %v2151_v33, %v2111_v46  ;;  %3413 = vmatpush1.bf16.msra.mxu1 %v4535_v31  ;;  %v4597_v31 = vld [vmem:[#allocation9 + $0x244] ss:$24 sps:$4 sm:$0xff]   ;;  %v4595_v36 = vld [vmem:[#allocation9 + $0x240] ss:$24 sps:$4 sm:$0xff]  }
 0x1c8   :  { %3454 = vmatpush1.bf16.msra.mxu0 %v4538_v34  ;;  %v2113_v47 = vpop.f32.mrf.mxu1  ;;  %v2154_v48 = vpop.f32.mrf.mxu0  ;;  %3414 = vmatprep.subr.bf16.mxu1 %v4543_v35  ;;  %v4600_v33 = vld [vmem:[#allocation9 + $0x544] ss:$24 sps:$4 sm:$0xff]   ;;  %v4598_v46 = vld [vmem:[#allocation9 + $0x540] ss:$24 sps:$4 sm:$0xff]   ;;  %v4606_v38 = vld [vmem:[#allocation9 + $0x514] ss:$24 sps:$4 sm:$0xff]  }
 0x1c9   :  { %v2410_v51 = vmul.f32 1.442695, %v2402_v41  ;;  %v2403_v52 = vsub.f32 0.0, %v2152_v42  ;;  %3455 = vmatprep.subr.bf16.mxu0 %v4546_v37  ;;  %v4603_v37 = vld [vmem:[#allocation9 + $0x214] ss:$24 sps:$4 sm:$0xff]  }
 0x1ca   :  { %v4601_v39 = vld [vmem:[#allocation9 + $0x210] ss:$24 sps:$4 sm:$0xff]   ;;  %v4609_v42 = vld [vmem:[#allocation9 + $0x1e4] ss:$24 sps:$4 sm:$0xff]   ;;  %v4607_v48 = vld [vmem:[#allocation9 + $0x1e0] ss:$24 sps:$4 sm:$0xff]  }
 0x1cb   :  { %4817 = vpow2.f32 %v2410_v51  ;;  %v2412_v54 = vmul.f32 1.442695, %v2403_v52  ;;  %3415 = vmatpush1.bf16.msra.mxu1 %v4541_v43  ;;  %v4604_v41 = vld [vmem:[#allocation9 + $0x510] ss:$24 sps:$4 sm:$0xff]   ;;  %v103_v43 = vsub.s32 4, %v5048_v17 }
 0x1cc   :  { %3456 = vmatpush1.bf16.msra.mxu0 %v4544_v49  ;;  %3416 = vmatprep.subr.bf16.mxu1 %v4549_v50  ;;  %v4612_v47 = vld [vmem:[#allocation9 + $0x4e4] ss:$24 sps:$4 sm:$0xff]   ;;  %v4610_v49 = vld [vmem:[#allocation9 + $0x4e0] ss:$24 sps:$4 sm:$0xff]   ;;  %v4615_v50 = vld [vmem:[#allocation9 + $0x1b4] ss:$24 sps:$4 sm:$0xff]  }
 0x1cd   :  { %4819 = vpow2.f32 %v2412_v54  ;;  %3457 = vmatprep.subr.bf16.mxu0 %v4552_v53  ;;  %v104_v51 = vrot.slane %v5085_v7, %v103_v43  ;;  %v4618_v52 = vld [vmem:[#allocation9 + $0x4b4] ss:$24 sps:$4 sm:$0xff]   ;;  %v4613_v53 = vld [vmem:[#allocation9 + $0x1b0] ss:$24 sps:$4 sm:$0xff]  }
 0x1ce   :  { %v4616_v54 = vld [vmem:[#allocation9 + $0x4b0] ss:$24 sps:$4 sm:$0xff]   ;;  %v4630_v7 = vld [vmem:[#allocation9 + $0x45c] ss:$24 sps:$4 sm:$0xff]  }
 0x1cf   :  { %3417 = vmatpush1.bf16.msra.mxu1 %v4547_v55  ;;  %v4621_v55 = vld [vmem:[#allocation9 + $0x184] ss:$24 sps:$4 sm:$0xff]   ;;  %v4655_v43 = vld [vmem:[#allocation9 + $0x68] ss:$24 sps:$4 sm:$0xff]  }
 0x1d0   :  { %3458 = vmatpush1.bf16.msra.mxu0 %v4550_v56  ;;  %3418 = vmatprep.subr.bf16.mxu1 %v4555_v57  ;;  %v328_v56 = vadd.f32 %v5083_v63, %v104_v51  ;;  %v4624_v57 = vld [vmem:[#allocation9 + $0x484] ss:$24 sps:$4 sm:$0xff]  }
 0x1d1   :  { %3459 = vmatprep.subr.bf16.mxu0 %v4558_v58  ;;  %v4619_v58 = vld [vmem:[#allocation9 + $0x180] ss:$24 sps:$4 sm:$0xff]   ;;  %v4633_v63 = vld [vmem:[#allocation9 + $0x12c] ss:$24 sps:$4 sm:$0xff]  }
 0x1d3   :  { %3419 = vmatpush1.bf16.msra.mxu1 %v4553_v59  ;;  %v4622_v59 = vld [vmem:[#allocation9 + $0x480] ss:$24 sps:$4 sm:$0xff]  }
 0x1d4   :  { %3460 = vmatpush1.bf16.msra.mxu0 %v4556_v60  ;;  %3420 = vmatprep.subr.bf16.mxu1 %v4561_v61  ;;  %v4627_v60 = vld [vmem:[#allocation9 + $0x15c] ss:$24 sps:$4 sm:$0xff]   ;;  %v336_v61 = vmax.f32 %v328_v56, 0.0 }
 0x1d5   :  { %3461 = vmatprep.subr.bf16.mxu0 %v4564_v62  ;;  %v4625_v62 = vld [vmem:[#allocation9 + $0x158] ss:$24 sps:$4 sm:$0xff]  }
 0x1d7   :  { %3421 = vmatpush1.bf16.msra.mxu1 %v4559_v0  ;;  %v4628_v0 = vld [vmem:[#allocation9 + $0x458] ss:$24 sps:$4 sm:$0xff]  }
 0x1d8   :  { %v4818_v5 = vpop.eup %4817  ;;  %3462 = vmatpush1.bf16.msra.mxu0 %v4562_v1  ;;  %3422 = vmatprep.subr.bf16.mxu1 %v4567_v2  ;;  %v5110_v1 = vpack.c.bf16 %v336_v61, %v336_v61  ;;  %v4670_v61 = vld [vmem:[#allocation9 + $0x308] ss:$24 sps:$4 sm:$0xff]  }
 0x1d9   :  { %v2426_v9 = vadd.f32 1.0, %v4818_v5  ;;  %3463 = vmatprep.subr.bf16.mxu0 %v4570_v3 }
 0x1da   :  { %v4820_v11 = vpop.eup %4819 }
 0x1db   :  { %v2427_v12 = vadd.f32 1.0, %v4820_v11  ;;  %3423 = vmatpush1.bf16.msra.mxu1 %v4565_v4  ;;  %4821 = vrcp.f32 %v2426_v9  ;;  %v4636_v4 = vld [vmem:[#allocation9 + $0x42c] ss:$24 sps:$4 sm:$0xff]   ;;  %v4639_v11 = vld [vmem:[#allocation9 + $0xfc] ss:$24 sps:$4 sm:$0xff]  }
 0x1dc   :  { %3464 = vmatpush1.bf16.msra.mxu0 %v4568_v6  ;;  %3424 = vmatprep.subr.bf16.mxu1 %v4573_v8  ;;  %v4631_v6 = vld [vmem:[#allocation9 + $0x128] ss:$24 sps:$4 sm:$0xff]  }
 0x1dd   :  { %4823 = vrcp.f32 %v2427_v12  ;;  %3465 = vmatprep.subr.bf16.mxu0 %v4576_v10  ;;  %v4634_v10 = vld [vmem:[#allocation9 + $0x428] ss:$24 sps:$4 sm:$0xff]  }
 0x1df   :  { %3425 = vmatpush1.bf16.msra.mxu1 %v4571_v13 }
 0x1e0   :  { %3466 = vmatpush1.bf16.msra.mxu0 %v4574_v14  ;;  %3426 = vmatprep.subr.bf16.mxu1 %v4579_v15  ;;  %v4642_v14 = vld [vmem:[#allocation9 + $0x3fc] ss:$24 sps:$4 sm:$0xff]  }
 0x1e1   :  { %3467 = vmatprep.subr.bf16.mxu0 %v4582_v16 }
 0x1e3   :  { %3427 = vmatpush2.bf16.msra.mxu1 %v4577_v19 }
 0x1e4   :  { %3468 = vmatpush2.bf16.msra.mxu0 %v4580_v20  ;;  %3428 = vmatprep.subr.bf16.mxu1 %v4585_v22  ;;  %v4637_v22 = vld [vmem:[#allocation9 + $0xf8] ss:$24 sps:$4 sm:$0xff]  }
 0x1e5   :  { %3469 = vmatprep.subr.bf16.mxu0 %v4588_v23 }
 0x1e7   :  { %3429 = vmatpush2.bf16.msra.mxu1 %v4583_v24 }
 0x1e8   :  { %3470 = vmatpush2.bf16.msra.mxu0 %v4586_v26  ;;  %3430 = vmatprep.subr.bf16.mxu1 %v4591_v27  ;;  %v5101_v32 = vpop.eup %4821  ;;  %v4640_v26 = vld [vmem:[#allocation9 + $0x3f8] ss:$24 sps:$4 sm:$0xff]   ;;  %v4645_v27 = vld [vmem:[#allocation9 + $0xcc] ss:$24 sps:$4 sm:$0xff]  }
 0x1e9   :  { %3471 = vmatprep.subr.bf16.mxu0 %v4594_v28 }
 0x1ea   :  { %v5103_v34 = vpop.eup %4823 }
 0x1eb   :  { %v3694_v35 = vcombine.low %v5101_v32, %v5103_v34  ;;  %3431 = vmatpush2.bf16.msra.mxu1 %v4589_v29  ;;  %v4694_v32 = vld [vmem:[#allocation9 + $0x548] ss:$24 sps:$4 sm:$0xff]   ;;  %v4699_v34 = vld [vmem:[#allocation9 + $0x21c] ss:$24 sps:$4 sm:$0xff]  }
 0x1ec   :  { %3472 = vmatpush2.bf16.msra.mxu0 %v4592_v44  ;;  %3432 = vmatprep.subr.bf16.mxu1 %v4597_v31  ;;  %v4648_v44 = vld [vmem:[#allocation9 + $0x3cc] ss:$24 sps:$4 sm:$0xff]  }
 0x1ed   :  { %3473 = vmatprep.subr.bf16.mxu0 %v4600_v33  ;;  %v4643_v33 = vld [vmem:[#allocation9 + $0xc8] ss:$24 sps:$4 sm:$0xff]  }
 0x1ef   :  { %3433 = vmatpush2.bf16.msra.mxu1 %v4595_v36  ;;  %v4646_v36 = vld [vmem:[#allocation9 + $0x3c8] ss:$24 sps:$4 sm:$0xff]  }
 0x1f0   :  { %3474 = vmatpush2.bf16.msra.mxu0 %v4598_v46  ;;  %3434 = vmatprep.subr.bf16.mxu1 %v4603_v37  ;;  %v4651_v46 = vld [vmem:[#allocation9 + $0x9c] ss:$24 sps:$4 sm:$0xff]  }
 0x1f1   :  { %3475 = vmatprep.subr.bf16.mxu0 %v4606_v38  ;;  %v4654_v37 = vld [vmem:[#allocation9 + $0x39c] ss:$24 sps:$4 sm:$0xff]   ;;  %v4649_v38 = vld [vmem:[#allocation9 + $0x98] ss:$24 sps:$4 sm:$0xff]  }
 0x1f3   :  { %3435 = vmatpush2.bf16.msra.mxu1 %v4601_v39  ;;  %v4652_v39 = vld [vmem:[#allocation9 + $0x398] ss:$24 sps:$4 sm:$0xff]  }
 0x1f4   :  { %3476 = vmatpush2.bf16.msra.mxu0 %v4604_v41  ;;  %3436 = vmatprep.subr.bf16.mxu1 %v4609_v42  ;;  %v4657_v41 = vld [vmem:[#allocation9 + $0x6c] ss:$24 sps:$4 sm:$0xff]  }
 0x1f5   :  { %3477 = vmatprep.subr.bf16.mxu0 %v4612_v47  ;;  %v4660_v42 = vld [vmem:[#allocation9 + $0x36c] ss:$24 sps:$4 sm:$0xff]   ;;  %v4658_v47 = vld [vmem:[#allocation9 + $0x368] ss:$24 sps:$4 sm:$0xff]  }
 0x1f7   :  { %3437 = vmatpush2.bf16.msra.mxu1 %v4607_v48  ;;  %v4663_v48 = vld [vmem:[#allocation9 + $0x3c] ss:$24 sps:$4 sm:$0xff]  }
 0x1f8   :  { %3478 = vmatpush2.bf16.msra.mxu0 %v4610_v49  ;;  %3438 = vmatprep.subr.bf16.mxu1 %v4615_v50  ;;  %v4666_v49 = vld [vmem:[#allocation9 + $0x33c] ss:$24 sps:$4 sm:$0xff]   ;;  %v4661_v50 = vld [vmem:[#allocation9 + $0x38] ss:$24 sps:$4 sm:$0xff]  }
 0x1f9   :  { %3479 = vmatprep.subr.bf16.mxu0 %v4618_v52  ;;  %v4664_v52 = vld [vmem:[#allocation9 + $0x338] ss:$24 sps:$4 sm:$0xff]  }
 0x1fb   :  { %3439 = vmatpush2.bf16.msra.mxu1 %v4613_v53  ;;  %v4669_v53 = vld [vmem:[#allocation9 + $0xc] ss:$24 sps:$4 sm:$0xff]  }
 0x1fc   :  { %3480 = vmatpush2.bf16.msra.mxu0 %v4616_v54  ;;  %3440 = vmatprep.subr.bf16.mxu1 %v4621_v55  ;;  %v4672_v55 = vld [vmem:[#allocation9 + $0x30c] ss:$24 sps:$4 sm:$0xff]  }
 0x1fd   :  { %3481 = vmatprep.subr.bf16.mxu0 %v4624_v57  ;;  %v4991_v57 = vmov 1966171168  }
 0x1ff   :  { %3441 = vmatpush2.bf16.msra.mxu1 %v4619_v58  ;;  %v3696_v58 = vunpack.c.l.s4 %v4991_v57  ;;  %v4712_v57 = vld [vmem:[#allocation9 + $0x4b8] ss:$24 sps:$4 sm:$0xff]  }
 0x200   :  { %3482 = vmatpush2.bf16.msra.mxu0 %v4622_v59  ;;  %3492 = vmatprep.subr.bf16.mxu1 %v4627_v60  ;;  %v4667_v60 = vld [vmem:[#allocation9 + $0x8] ss:$24 sps:$4 sm:$0xff]  }
 0x201   :  { %3533 = vmatprep.subr.bf16.mxu0 %v4630_v7  ;;  %v4675_v7 = vld [vmem:[#allocation9 + $0x2dc] ss:$24 sps:$4 sm:$0xff]  }
 0x202   :  { %v2190_v2 = vpop.f32.mrf.mxu1  ;;  %v2231_v3 = vpop.f32.mrf.mxu0  ;;  %3443 = vmatmul.mubr.bf16.vlgmr.msra.gmra.mxu1 %v5060_v40 }
 0x203   :  { %v2191_v5 = vadd.f32 %v2190_v2, %v5091_v25  ;;  %3484 = vmatmul.mubr.bf16.vlgmr.msra.gmra.mxu0 %v5110_v1  ;;  %3493 = vmatpush1.bf16.msra.mxu1 %v4625_v62  ;;  %v4678_v62 = vld [vmem:[#allocation9 + $0x5dc] ss:$24 sps:$4 sm:$0xff]   ;;  %v4676_v2 = vld [vmem:[#allocation9 + $0x5d8] ss:$24 sps:$4 sm:$0xff]  }
 0x204   :  { %3524 = vmatprep.mubr.bf16.mxu1 %v5064_v45  ;;  %3534 = vmatpush1.bf16.msra.mxu0 %v4628_v0  ;;  %v2192_v8 = vpop.f32.mrf.mxu1  ;;  %v2233_v9 = vpop.f32.mrf.mxu0  ;;  %v3697_v0 = vunpack.c.0.s8 %v3696_v58  ;;  %v4717_v58 = vld [vmem:[#allocation9 + $0x18c] ss:$24 sps:$4 sm:$0xff]  }
 0x205   :  { %v2232_v12 = vadd.f32 %v2231_v3, %v2191_v5  ;;  %3565 = vmatprep.mubr.bf16.mxu0 %v5094_v30  ;;  %v2193_v13 = vadd.f32 %v2192_v8, %v5091_v25  ;;  %3494 = vmatprep.subr.bf16.mxu1 %v4633_v63  ;;  %v4673_v63 = vld [vmem:[#allocation9 + $0x2d8] ss:$24 sps:$4 sm:$0xff]   ;;  %v4681_v3 = vld [vmem:[#allocation9 + $0x2ac] ss:$24 sps:$4 sm:$0xff]   ;;  %v4682_v8 = vld [vmem:[#allocation9 + $0x5a8] ss:$24 sps:$4 sm:$0xff]  }
 0x206   :  { %v2194_v15 = vpop.f32.mrf.mxu1  ;;  %v2235_v16 = vpop.f32.mrf.mxu0  ;;  %3535 = vmatprep.subr.bf16.mxu0 %v4636_v4  ;;  %v4684_v4 = vld [vmem:[#allocation9 + $0x5ac] ss:$24 sps:$4 sm:$0xff]   ;;  %v5119_v5 = vsub.s32 %v3697_v0, %v5048_v17  ;;  %v4721_v0 = vld [vmem:[#allocation9 + $0x160] ss:$24 sps:$4 sm:$0xff]  }
 0x207   :  { %v2404_v19 = vsub.f32 0.0, %v2232_v12  ;;  %v2234_v20 = vadd.f32 %v2233_v9, %v2193_v13  ;;  %3495 = vmatpush1.bf16.msra.mxu1 %v4631_v6  ;;  %v4679_v6 = vld [vmem:[#allocation9 + $0x2a8] ss:$24 sps:$4 sm:$0xff]   ;;  %v4687_v9 = vld [vmem:[#allocation9 + $0x27c] ss:$24 sps:$4 sm:$0xff]  }
 0x208   :  { %3536 = vmatpush1.bf16.msra.mxu0 %v4634_v10  ;;  %v2195_v23 = vpop.f32.mrf.mxu1  ;;  %v2236_v24 = vpop.f32.mrf.mxu0  ;;  %3496 = vmatprep.subr.bf16.mxu1 %v4639_v11  ;;  %v4690_v10 = vld [vmem:[#allocation9 + $0x57c] ss:$24 sps:$4 sm:$0xff]   ;;  %v3701_v11 = vrot.slane %v3694_v35, %v5119_v5  ;;  %v4685_v12 = vld [vmem:[#allocation9 + $0x278] ss:$24 sps:$4 sm:$0xff]   ;;  %v4693_v17 = vld [vmem:[#allocation9 + $0x24c] ss:$24 sps:$4 sm:$0xff]  }
 0x209   :  { %v2414_v28 = vmul.f32 1.442695, %v2404_v19  ;;  %v2405_v29 = vsub.f32 0.0, %v2234_v20  ;;  %3537 = vmatprep.subr.bf16.mxu0 %v4642_v14  ;;  %v4688_v13 = vld [vmem:[#allocation9 + $0x578] ss:$24 sps:$4 sm:$0xff]  }
 0x20a   :  { %v4696_v15 = vld [vmem:[#allocation9 + $0x54c] ss:$24 sps:$4 sm:$0xff]   ;;  %v3702_v19 = vcombine.high %v3701_v11, %v3701_v11  ;;  %v3709_v23 = vrot.slane %v3701_v11, %v5119_v5  ;;  %v4702_v24 = vld [vmem:[#allocation9 + $0x51c] ss:$24 sps:$4 sm:$0xff]   ;;  %v4730_v11 = vld [vmem:[#allocation9 + $0x430] ss:$24 sps:$4 sm:$0xff]  }
 0x20b   :  { %4825 = vpow2.f32 %v2414_v28  ;;  %v2416_v31 = vmul.f32 1.442695, %v2405_v29  ;;  %3497 = vmatpush1.bf16.msra.mxu1 %v4637_v22  ;;  %v4691_v22 = vld [vmem:[#allocation9 + $0x248] ss:$24 sps:$4 sm:$0xff]   ;;  %v4697_v29 = vld [vmem:[#allocation9 + $0x218] ss:$24 sps:$4 sm:$0xff]  }
 0x20c   :  { %3538 = vmatpush1.bf16.msra.mxu0 %v4640_v26  ;;  %3498 = vmatprep.subr.bf16.mxu1 %v4645_v27  ;;  %v3716_v26 = vrot.slane %v3702_v19, %v5119_v5 }
 0x20d   :  { %4827 = vpow2.f32 %v2416_v31  ;;  %3539 = vmatprep.subr.bf16.mxu0 %v4648_v44  ;;  %v3890_v44 = vrot.slane %v3709_v23, %v5051_v18  ;;  %v4700_v31 = vld [vmem:[#allocation9 + $0x518] ss:$24 sps:$4 sm:$0xff]  }
 0x20f   :  { %3499 = vmatpush1.bf16.msra.mxu1 %v4643_v33  ;;  %v4705_v33 = vld [vmem:[#allocation9 + $0x1ec] ss:$24 sps:$4 sm:$0xff]  }
 0x210   :  { %3540 = vmatpush1.bf16.msra.mxu0 %v4646_v36  ;;  %3500 = vmatprep.subr.bf16.mxu1 %v4651_v46  ;;  %v3894_v36 = vrot.slane %v3709_v23, %v5055_v21  ;;  %v4733_v23 = vld [vmem:[#allocation9 + $0x100] ss:$24 sps:$4 sm:$0xff]  }
 0x211   :  { %3541 = vmatprep.subr.bf16.mxu0 %v4654_v37 }
 0x213   :  { %3501 = vmatpush1.bf16.msra.mxu1 %v4649_v38 }
 0x214   :  { %3542 = vmatpush1.bf16.msra.mxu0 %v4652_v39  ;;  %3502 = vmatprep.subr.bf16.mxu1 %v4657_v41  ;;  %v4708_v39 = vld [vmem:[#allocation9 + $0x4ec] ss:$24 sps:$4 sm:$0xff]   ;;  %v3898_v41 = vrot.slane %v3716_v26, %v5051_v18 }
 0x215   :  { %3543 = vmatprep.subr.bf16.mxu0 %v4660_v42  ;;  %v3902_v42 = vrot.slane %v3716_v26, %v5055_v21  ;;  %v4744_v26 = vld [vmem:[#allocation9 + $0x3d4] ss:$24 sps:$4 sm:$0xff]  }
 0x217   :  { %3503 = vmatpush1.bf16.msra.mxu1 %v4655_v43 }
 0x218   :  { %v4826_v51 = vpop.eup %4825  ;;  %3544 = vmatpush1.bf16.msra.mxu0 %v4658_v47  ;;  %3504 = vmatprep.subr.bf16.mxu1 %v4663_v48 }
 0x219   :  { %v2428_v54 = vadd.f32 1.0, %v4826_v51  ;;  %3545 = vmatprep.subr.bf16.mxu0 %v4666_v49  ;;  %v4706_v51 = vld [vmem:[#allocation9 + $0x4e8] ss:$24 sps:$4 sm:$0xff]  }
 0x21a   :  { %v4828_v56 = vpop.eup %4827 }
 0x21b   :  { %v2429_v59 = vadd.f32 1.0, %v4828_v56  ;;  %3505 = vmatpush1.bf16.msra.mxu1 %v4661_v50  ;;  %4829 = vrcp.f32 %v2428_v54  ;;  %v4703_v50 = vld [vmem:[#allocation9 + $0x1e8] ss:$24 sps:$4 sm:$0xff]   ;;  %v4709_v56 = vld [vmem:[#allocation9 + $0x1b8] ss:$24 sps:$4 sm:$0xff]  }
 0x21c   :  { %3546 = vmatpush1.bf16.msra.mxu0 %v4664_v52  ;;  %3506 = vmatprep.subr.bf16.mxu1 %v4669_v53  ;;  %v4711_v52 = vld [vmem:[#allocation9 + $0x1bc] ss:$24 sps:$4 sm:$0xff]  }
 0x21d   :  { %4831 = vrcp.f32 %v2429_v59  ;;  %3547 = vmatprep.subr.bf16.mxu0 %v4672_v55  ;;  %v4714_v55 = vld [vmem:[#allocation9 + $0x4bc] ss:$24 sps:$4 sm:$0xff]   ;;  %v4720_v59 = vld [vmem:[#allocation9 + $0x48c] ss:$24 sps:$4 sm:$0xff]  }
 0x21f   :  { %3507 = vmatpush1.bf16.msra.mxu1 %v4667_v60  ;;  %v4715_v60 = vld [vmem:[#allocation9 + $0x188] ss:$24 sps:$4 sm:$0xff]  }
 0x220   :  { %3548 = vmatpush1.bf16.msra.mxu0 %v4670_v61  ;;  %3508 = vmatprep.subr.bf16.mxu1 %v4675_v7  ;;  %v4718_v61 = vld [vmem:[#allocation9 + $0x488] ss:$24 sps:$4 sm:$0xff]   ;;  %v4723_v7 = vld [vmem:[#allocation9 + $0x164] ss:$24 sps:$4 sm:$0xff]  }
 0x221   :  { %3549 = vmatprep.subr.bf16.mxu0 %v4678_v62  ;;  %v4726_v62 = vld [vmem:[#allocation9 + $0x464] ss:$24 sps:$4 sm:$0xff]  }
 0x223   :  { %3509 = vmatpush2.bf16.msra.mxu1 %v4673_v63  ;;  %v4724_v63 = vld [vmem:[#allocation9 + $0x460] ss:$24 sps:$4 sm:$0xff]  }
 0x224   :  { %3550 = vmatpush2.bf16.msra.mxu0 %v4676_v2  ;;  %3510 = vmatprep.subr.bf16.mxu1 %v4681_v3  ;;  %v4729_v2 = vld [vmem:[#allocation9 + $0x134] ss:$24 sps:$4 sm:$0xff]  }
 0x225   :  { %3551 = vmatprep.subr.bf16.mxu0 %v4684_v4  ;;  %v4732_v4 = vld [vmem:[#allocation9 + $0x434] ss:$24 sps:$4 sm:$0xff]  }
 0x227   :  { %3511 = vmatpush2.bf16.msra.mxu1 %v4679_v6 }
 0x228   :  { %3552 = vmatpush2.bf16.msra.mxu0 %v4682_v8  ;;  %3512 = vmatprep.subr.bf16.mxu1 %v4687_v9  ;;  %v4830_v14 = vpop.eup %4829  ;;  %v4727_v9 = vld [vmem:[#allocation9 + $0x130] ss:$24 sps:$4 sm:$0xff]  }
 0x229   :  { %3553 = vmatprep.subr.bf16.mxu0 %v4690_v10 }
 0x22a   :  { %v4832_v16 = vpop.eup %4831 }
 0x22b   :  { %v3719_v20 = vcombine.low %v4830_v14, %v4832_v16  ;;  %3513 = vmatpush2.bf16.msra.mxu1 %v4685_v12  ;;  %v4735_v12 = vld [vmem:[#allocation9 + $0x104] ss:$24 sps:$4 sm:$0xff]  }
 0x22c   :  { %3554 = vmatpush2.bf16.msra.mxu0 %v4688_v13  ;;  %3514 = vmatprep.subr.bf16.mxu1 %v4693_v17 }
 0x22d   :  { %v3726_v35 = vrot.slane %v3719_v20, %v5119_v5  ;;  %3555 = vmatprep.subr.bf16.mxu0 %v4696_v15  ;;  %v4738_v15 = vld [vmem:[#allocation9 + $0x404] ss:$24 sps:$4 sm:$0xff]  }
 0x22f   :  { %v3727_v27 = vcombine.high %v3726_v35, %v3726_v35  ;;  %v3734_v28 = vrot.slane %v3726_v35, %v5119_v5  ;;  %3515 = vmatpush2.bf16.msra.mxu1 %v4691_v22 }
 0x230   :  { %3556 = vmatpush2.bf16.msra.mxu0 %v4694_v32  ;;  %3516 = vmatprep.subr.bf16.mxu1 %v4699_v34  ;;  %v4736_v32 = vld [vmem:[#allocation9 + $0x400] ss:$24 sps:$4 sm:$0xff]   ;;  %v4741_v34 = vld [vmem:[#allocation9 + $0xd4] ss:$24 sps:$4 sm:$0xff]  }
 0x231   :  { %v3741_v46 = vrot.slane %v3727_v27, %v5119_v5  ;;  %v3910_v37 = vrot.slane %v3734_v28, %v5051_v18  ;;  %v3914_v38 = vrot.slane %v3734_v28, %v5055_v21  ;;  %3557 = vmatprep.subr.bf16.mxu0 %v4702_v24  ;;  %v4739_v28 = vld [vmem:[#allocation9 + $0xd0] ss:$24 sps:$4 sm:$0xff]  }
 0x233   :  { %v3918_v43 = vrot.slane %v3741_v46, %v5051_v18  ;;  %v3922_v47 = vrot.slane %v3741_v46, %v5055_v21  ;;  %v5139_v48 = vsel %vm4007_vm1, %v3890_v44, %v3910_v37  ;;  %v5142_v49 = vsel %vm4007_vm1, %v3894_v36, %v3914_v38  ;;  %3517 = vmatpush2.bf16.msra.mxu1 %v4697_v29  ;;  %v4742_v29 = vld [vmem:[#allocation9 + $0x3d0] ss:$24 sps:$4 sm:$0xff]   ;;  %v4747_v44 = vld [vmem:[#allocation9 + $0xa4] ss:$24 sps:$4 sm:$0xff]   ;;  %v4748_v36 = vld [vmem:[#allocation9 + $0x3a0] ss:$24 sps:$4 sm:$0xff]  }
 0x234   :  { %3558 = vmatpush2.bf16.msra.mxu0 %v4700_v31  ;;  %3518 = vmatprep.subr.bf16.mxu1 %v4705_v33  ;;  %v4750_v31 = vld [vmem:[#allocation9 + $0x3a4] ss:$24 sps:$4 sm:$0xff]   ;;  %v4745_v33 = vld [vmem:[#allocation9 + $0xa0] ss:$24 sps:$4 sm:$0xff]   ;;  %v4753_v46 = vld [vmem:[#allocation9 + $0x74] ss:$24 sps:$4 sm:$0xff]  }
 0x235   :  { %v5145_v53 = vsel %vm4007_vm1, %v3898_v41, %v3918_v43  ;;  %v5148_v54 = vsel %vm4007_vm1, %v3902_v42, %v3922_v47  ;;  %3559 = vmatprep.subr.bf16.mxu0 %v4708_v39  ;;  %v4756_v37 = vld [vmem:[#allocation9 + $0x374] ss:$24 sps:$4 sm:$0xff]   ;;  %v4751_v38 = vld [vmem:[#allocation9 + $0x70] ss:$24 sps:$4 sm:$0xff]   ;;  %v4759_v41 = vld [vmem:[#allocation9 + $0x44] ss:$24 sps:$4 sm:$0xff]  }
 0x236   :  { %v4754_v39 = vld [vmem:[#allocation9 + $0x370] ss:$24 sps:$4 sm:$0xff]   ;;  %v4762_v42 = vld [vmem:[#allocation9 + $0x344] ss:$24 sps:$4 sm:$0xff]   ;;  %v4757_v43 = vld [vmem:[#allocation9 + $0x40] ss:$24 sps:$4 sm:$0xff]  }
 0x237   :  { %3519 = vmatpush2.bf16.msra.mxu1 %v4703_v50  ;;  %v4760_v50 = vld [vmem:[#allocation9 + $0x340] ss:$24 sps:$4 sm:$0xff]  }
 0x238   :  { %3560 = vmatpush2.bf16.msra.mxu0 %v4706_v51  ;;  %3520 = vmatprep.subr.bf16.mxu1 %v4711_v52  ;;  %v4765_v51 = vld [vmem:[#allocation9 + $0x14] ss:$24 sps:$4 sm:$0xff]  }
 0x239   :  { %3561 = vmatprep.subr.bf16.mxu0 %v4714_v55  ;;  %v4768_v55 = vld [vmem:[#allocation9 + $0x314] ss:$24 sps:$4 sm:$0xff]  }
 0x23b   :  { %3521 = vmatpush2.bf16.msra.mxu1 %v4709_v56 }
 0x23c   :  { %3562 = vmatpush2.bf16.msra.mxu0 %v4712_v57  ;;  %3522 = vmatprep.subr.bf16.mxu1 %v4717_v58  ;;  %v4763_v58 = vld [vmem:[#allocation9 + $0x10] ss:$24 sps:$4 sm:$0xff]  }
 0x23d   :  { %3563 = vmatprep.subr.bf16.mxu0 %v4720_v59  ;;  %v4766_v59 = vld [vmem:[#allocation9 + $0x310] ss:$24 sps:$4 sm:$0xff]  }
 0x23f   :  { %3523 = vmatpush2.bf16.msra.mxu1 %v4715_v60  ;;  %v4771_v60 = vld [vmem:[#allocation9 + $0x2e4] ss:$24 sps:$4 sm:$0xff]  }
 0x240   :  { %3564 = vmatpush2.bf16.msra.mxu0 %v4718_v61  ;;  %3574 = vmatprep.subr.bf16.mxu1 %v4723_v7  ;;  %v4774_v61 = vld [vmem:[#allocation9 + $0x5e4] ss:$24 sps:$4 sm:$0xff]   ;;  %v4769_v7 = vld [vmem:[#allocation9 + $0x2e0] ss:$24 sps:$4 sm:$0xff]  }
 0x241   :  { %3615 = vmatprep.subr.bf16.mxu0 %v4726_v62  ;;  %v4772_v62 = vld [vmem:[#allocation9 + $0x5e0] ss:$24 sps:$4 sm:$0xff]  }
 0x242   :  { %v2272_v3 = vpop.f32.mrf.mxu1  ;;  %3525 = vmatmul.mubr.bf16.vlgmr.msra.gmra.mxu1 %v5060_v40 }
 0x243   :  { %v2273_v6 = vadd.f32 %v2272_v3, %v5091_v25  ;;  %v2313_v8 = vpop.f32.mrf.mxu0  ;;  %3566 = vmatmul.mubr.bf16.vlgmr.msra.gmra.mxu0 %v5110_v1  ;;  %3575 = vmatpush1.bf16.msra.mxu1 %v4721_v0  ;;  %v4777_v0 = vld [vmem:[#allocation9 + $0x2b4] ss:$24 sps:$4 sm:$0xff]   ;;  %v4778_v3 = vld [vmem:[#allocation9 + $0x5b0] ss:$24 sps:$4 sm:$0xff]  }
 0x244   :  { %3606 = vmatprep.mubr.bf16.mxu1 %v5064_v45  ;;  %3616 = vmatpush1.bf16.msra.mxu0 %v4724_v63  ;;  %v2274_v10 = vpop.f32.mrf.mxu1  ;;  %v4780_v63 = vld [vmem:[#allocation9 + $0x5b4] ss:$24 sps:$4 sm:$0xff]  }
 0x245   :  { %v2314_v13 = vadd.f32 %v2313_v8, %v2273_v6  ;;  %3647 = vmatprep.mubr.bf16.mxu0 %v5094_v30  ;;  %v2275_v17 = vadd.f32 %v2274_v10, %v5091_v25  ;;  %v2315_v14 = vpop.f32.mrf.mxu0  ;;  %3576 = vmatprep.subr.bf16.mxu1 %v4729_v2  ;;  %v4775_v2 = vld [vmem:[#allocation9 + $0x2b0] ss:$24 sps:$4 sm:$0xff]   ;;  %v4786_v6 = vld [vmem:[#allocation9 + $0x584] ss:$24 sps:$4 sm:$0xff]   ;;  %v4781_v8 = vld [vmem:[#allocation9 + $0x280] ss:$24 sps:$4 sm:$0xff]  }
 0x246   :  { %v2276_v16 = vpop.f32.mrf.mxu1  ;;  %3617 = vmatprep.subr.bf16.mxu0 %v4732_v4  ;;  %v4783_v4 = vld [vmem:[#allocation9 + $0x284] ss:$24 sps:$4 sm:$0xff]   ;;  %v4789_v10 = vld [vmem:[#allocation9 + $0x254] ss:$24 sps:$4 sm:$0xff]  }
 0x247   :  { %v2406_v19 = vsub.f32 0.0, %v2314_v13  ;;  %v2316_v20 = vadd.f32 %v2315_v14, %v2275_v17  ;;  %v2317_v22 = vpop.f32.mrf.mxu0  ;;  %3577 = vmatpush1.bf16.msra.mxu1 %v4727_v9  ;;  %v4784_v9 = vld [vmem:[#allocation9 + $0x580] ss:$24 sps:$4 sm:$0xff]   ;;  %v4787_v14 = vld [vmem:[#allocation9 + $0x250] ss:$24 sps:$4 sm:$0xff]  }
 0x248   :  { %3618 = vmatpush1.bf16.msra.mxu0 %v4730_v11  ;;  %v2277_v45 = vpop.f32.mrf.mxu1  ;;  %3578 = vmatprep.subr.bf16.mxu1 %v4735_v12  ;;  %v4792_v12 = vld [vmem:[#allocation9 + $0x554] ss:$24 sps:$4 sm:$0xff]   ;;  %v4795_v16 = vld [vmem:[#allocation9 + $0x224] ss:$24 sps:$4 sm:$0xff]  }
 0x249   :  { %v2418_v35 = vmul.f32 1.442695, %v2406_v19  ;;  %v2407_v24 = vsub.f32 0.0, %v2316_v20  ;;  %v2318_v30 = vpop.f32.mrf.mxu0  ;;  %3619 = vmatprep.subr.bf16.mxu0 %v4738_v15  ;;  %v4790_v15 = vld [vmem:[#allocation9 + $0x550] ss:$24 sps:$4 sm:$0xff]  }
 0x24a   :  { %v4798_v20 = vld [vmem:[#allocation9 + $0x524] ss:$24 sps:$4 sm:$0xff]   ;;  %v4793_v45 = vld [vmem:[#allocation9 + $0x220] ss:$24 sps:$4 sm:$0xff]  }
 0x24b   :  { %4833 = vpow2.f32 %v2418_v35  ;;  %v2420_v27 = vmul.f32 1.442695, %v2407_v24  ;;  %3579 = vmatpush1.bf16.msra.mxu1 %v4733_v23 }
 0x24c   :  { %3620 = vmatpush1.bf16.msra.mxu0 %v4736_v32  ;;  %3580 = vmatprep.subr.bf16.mxu1 %v4741_v34  ;;  %v4796_v32 = vld [vmem:[#allocation9 + $0x520] ss:$24 sps:$4 sm:$0xff]   ;;  %v4801_v34 = vld [vmem:[#allocation9 + $0x1f4] ss:$24 sps:$4 sm:$0xff]  }
 0x24d   :  { %4835 = vpow2.f32 %v2420_v27  ;;  %3621 = vmatprep.subr.bf16.mxu0 %v4744_v26  ;;  %v4804_v26 = vld [vmem:[#allocation9 + $0x4f4] ss:$24 sps:$4 sm:$0xff]  }
 0x24f   :  { %3581 = vmatpush1.bf16.msra.mxu1 %v4739_v28 }
 0x250   :  { %3622 = vmatpush1.bf16.msra.mxu0 %v4742_v29  ;;  %3582 = vmatprep.subr.bf16.mxu1 %v4747_v44 }
 0x251   :  { %3623 = vmatprep.subr.bf16.mxu0 %v4750_v31  ;;  %v4799_v31 = vld [vmem:[#allocation9 + $0x1f0] ss:$24 sps:$4 sm:$0xff]  }
 0x253   :  { %3583 = vmatpush1.bf16.msra.mxu1 %v4745_v33  ;;  %v4802_v33 = vld [vmem:[#allocation9 + $0x4f0] ss:$24 sps:$4 sm:$0xff]  }
 0x254   :  { %3624 = vmatpush1.bf16.msra.mxu0 %v4748_v36  ;;  %3584 = vmatprep.subr.bf16.mxu1 %v4753_v46  ;;  %v4807_v36 = vld [vmem:[#allocation9 + $0x1c4] ss:$24 sps:$4 sm:$0xff]  }
 0x255   :  { %3625 = vmatprep.subr.bf16.mxu0 %v4756_v37 }
 0x257   :  { %3585 = vmatpush1.bf16.msra.mxu1 %v4751_v38  ;;  %v4805_v38 = vld [vmem:[#allocation9 + $0x1c0] ss:$24 sps:$4 sm:$0xff]  }
 0x258   :  { %v4834_v47 = vpop.eup %4833  ;;  %3626 = vmatpush1.bf16.msra.mxu0 %v4754_v39  ;;  %3586 = vmatprep.subr.bf16.mxu1 %v4759_v41  ;;  %v4813_v39 = vld [vmem:[#allocation9 + $0x194] ss:$24 sps:$4 sm:$0xff]  }
 0x259   :  { %v2430_v52 = vadd.f32 1.0, %v4834_v47  ;;  %3627 = vmatprep.subr.bf16.mxu0 %v4762_v42  ;;  %v4816_v41 = vld [vmem:[#allocation9 + $0x494] ss:$24 sps:$4 sm:$0xff]   ;;  %v4811_v42 = vld [vmem:[#allocation9 + $0x190] ss:$24 sps:$4 sm:$0xff]  }
 0x25a   :  { %v4836_v56 = vpop.eup %4835 }
 0x25b   :  { %v2431_v57 = vadd.f32 1.0, %v4836_v56  ;;  %3587 = vmatpush1.bf16.msra.mxu1 %v4757_v43  ;;  %4837 = vrcp.f32 %v2430_v52 }
 0x25c   :  { %3628 = vmatpush1.bf16.msra.mxu0 %v4760_v50  ;;  %3588 = vmatprep.subr.bf16.mxu1 %v4765_v51 }
 0x25d   :  { %4839 = vrcp.f32 %v2431_v57  ;;  %3629 = vmatprep.subr.bf16.mxu0 %v4768_v55 }
 0x25f   :  { %3589 = vmatpush1.bf16.msra.mxu1 %v4763_v58 }
 0x260   :  { %3630 = vmatpush1.bf16.msra.mxu0 %v4766_v59  ;;  %3590 = vmatprep.subr.bf16.mxu1 %v4771_v60 }
 0x261   :  { %3631 = vmatprep.subr.bf16.mxu0 %v4774_v61 }
 0x263   :  { %3591 = vmatpush2.bf16.msra.mxu1 %v4769_v7 }
 0x264   :  { %3632 = vmatpush2.bf16.msra.mxu0 %v4772_v62  ;;  %3592 = vmatprep.subr.bf16.mxu1 %v4777_v0 }
 0x265   :  { %3633 = vmatprep.subr.bf16.mxu0 %v4780_v63 }
 0x267   :  { %3593 = vmatpush2.bf16.msra.mxu1 %v4775_v2 }
 0x268   :  { %3634 = vmatpush2.bf16.msra.mxu0 %v4778_v3  ;;  %3594 = vmatprep.subr.bf16.mxu1 %v4783_v4  ;;  %v4838_v11 = vpop.eup %4837 }
 0x269   :  { %3635 = vmatprep.subr.bf16.mxu0 %v4786_v6 }
 0x26a   :  { %v4840_v13 = vpop.eup %4839 }
 0x26b   :  { %v3744_v17 = vcombine.low %v4838_v11, %v4840_v13  ;;  %3595 = vmatpush2.bf16.msra.mxu1 %v4781_v8 }
 0x26c   :  { %3636 = vmatpush2.bf16.msra.mxu0 %v4784_v9  ;;  %3596 = vmatprep.subr.bf16.mxu1 %v4789_v10 }
 0x26d   :  { %v3751_v19 = vrot.slane %v3744_v17, %v5119_v5  ;;  %3637 = vmatprep.subr.bf16.mxu0 %v4792_v12 }
 0x26f   :  { %v3752_v22 = vcombine.high %v3751_v19, %v3751_v19  ;;  %v3759_v23 = vrot.slane %v3751_v19, %v5119_v5  ;;  %3597 = vmatpush2.bf16.msra.mxu1 %v4787_v14 }
 0x270   :  { %3638 = vmatpush2.bf16.msra.mxu0 %v4790_v15  ;;  %3598 = vmatprep.subr.bf16.mxu1 %v4795_v16 }
 0x271   :  { %v3766_v35 = vrot.slane %v3752_v22, %v5119_v5  ;;  %v3930_v24 = vrot.slane %v3759_v23, %v5051_v18  ;;  %v3934_v30 = vrot.slane %v3759_v23, %v5055_v21  ;;  %3639 = vmatprep.subr.bf16.mxu0 %v4798_v20 }
 0x273   :  { %v3938_v27 = vrot.slane %v3766_v35, %v5051_v18  ;;  %v3942_v28 = vrot.slane %v3766_v35, %v5055_v21  ;;  %v5165_v29 = vsel %vm4012_vm2, %v5139_v48, %v3930_v24  ;;  %v5169_v44 = vsel %vm4012_vm2, %v5142_v49, %v3934_v30  ;;  %3599 = vmatpush2.bf16.msra.mxu1 %v4793_v45  ;;  %v4810_v48 = vld [vmem:[#allocation9 + $0x4c4] ss:$24 sps:$4 sm:$0xff]   ;;  %v4808_v49 = vld [vmem:[#allocation9 + $0x4c0] ss:$24 sps:$4 sm:$0xff]  }
 0x274   :  { %3640 = vmatpush2.bf16.msra.mxu0 %v4796_v32  ;;  %3600 = vmatprep.subr.bf16.mxu1 %v4801_v34 }
 0x275   :  { %v5173_v46 = vsel %vm4012_vm2, %v5145_v53, %v3938_v27  ;;  %v5177_v37 = vsel %vm4012_vm2, %v5148_v54, %v3942_v28  ;;  %3641 = vmatprep.subr.bf16.mxu0 %v4804_v26  ;;  %v4814_v53 = vld [vmem:[#allocation9 + $0x490] ss:$24 sps:$4 sm:$0xff]  }
 0x277   :  { %3601 = vmatpush2.bf16.msra.mxu1 %v4799_v31 }
 0x278   :  { %3642 = vmatpush2.bf16.msra.mxu0 %v4802_v33  ;;  %3602 = vmatprep.subr.bf16.mxu1 %v4807_v36 }
 0x279   :  { %3643 = vmatprep.subr.bf16.mxu0 %v4810_v48 }
 0x27b   :  { %3603 = vmatpush2.bf16.msra.mxu1 %v4805_v38 }
 0x27c   :  { %3644 = vmatpush2.bf16.msra.mxu0 %v4808_v49  ;;  %3604 = vmatprep.subr.bf16.mxu1 %v4813_v39 }
 0x27d   :  { %3645 = vmatprep.subr.bf16.mxu0 %v4816_v41 }
 0x27f   :  { %3605 = vmatpush2.bf16.msra.mxu1 %v4811_v42 }
 0x280   :  { %3646 = vmatpush2.bf16.msra.mxu0 %v4814_v53 }
 0x282   :  { %v2354_v54 = vpop.f32.mrf.mxu1  ;;  %3607 = vmatmul.mubr.bf16.vlgmr.msra.gmra.mxu1 %v5060_v40 }
 0x283   :  { %v2355_v43 = vadd.f32 %v2354_v54, %v5091_v25  ;;  %v2395_v47 = vpop.f32.mrf.mxu0  ;;  %3648 = vmatmul.mubr.bf16.vlgmr.msra.gmra.mxu0 %v5110_v1 }
 0x284   :  { %v2356_v50 = vpop.f32.mrf.mxu1 }
 0x285   :  { %v2396_v51 = vadd.f32 %v2395_v47, %v2355_v43  ;;  %v2357_v52 = vadd.f32 %v2356_v50, %v5091_v25  ;;  %v2397_v55 = vpop.f32.mrf.mxu0 }
 0x286   :  { %v2358_v56 = vpop.f32.mrf.mxu1 }
 0x287   :  { %v2408_v57 = vsub.f32 0.0, %v2396_v51  ;;  %v2398_v58 = vadd.f32 %v2397_v55, %v2357_v52  ;;  %v2399_v59 = vpop.f32.mrf.mxu0 }
 0x288   :  { %v2359_v60 = vpop.f32.mrf.mxu1 }
 0x289   :  { %v2422_v61 = vmul.f32 1.442695, %v2408_v57  ;;  %v2409_v7 = vsub.f32 0.0, %v2398_v58  ;;  %v2400_v62 = vpop.f32.mrf.mxu0 }
 0x28b   :  { %4841 = vpow2.f32 %v2422_v61  ;;  %v2424_v40 = vmul.f32 1.442695, %v2409_v7 }
 0x28d   :  { %4843 = vpow2.f32 %v2424_v40 }
 0x298   :  { %v4842_v0 = vpop.eup %4841 }
 0x299   :  { %v2432_v63 = vadd.f32 1.0, %v4842_v0 }
 0x29a   :  { %v4844_v2 = vpop.eup %4843 }
 0x29b   :  { %v2433_v1 = vadd.f32 1.0, %v4844_v2  ;;  %4845 = vrcp.f32 %v2432_v63 }
 0x29d   :  { %4847 = vrcp.f32 %v2433_v1 }
 0x2a8   :  { %v4846_v3 = vpop.eup %4845 }
 0x2aa   :  { %v4848_v4 = vpop.eup %4847 }
 0x2ab   :  { %v3769_v6 = vcombine.low %v4846_v3, %v4848_v4 }
 0x2ad   :  { %v3776_v8 = vrot.slane %v3769_v6, %v5119_v5 }
 0x2af   :  { %v3777_v9 = vcombine.high %v3776_v8, %v3776_v8  ;;  %v3784_v10 = vrot.slane %v3776_v8, %v5119_v5 }
 0x2b1   :  { %v3791_v11 = vrot.slane %v3777_v9, %v5119_v5  ;;  %v3795_v12 = vrot.slane %v3784_v10, %v5051_v18  ;;  %v3799_v13 = vrot.slane %v3784_v10, %v5055_v21 }
 0x2b3   :  { %v3803_v17 = vrot.slane %v3791_v11, %v5051_v18  ;;  %v3807_v14 = vrot.slane %v3791_v11, %v5055_v21  ;;  %v4018_v15 = vsel %vm4017_vm3, %v5165_v29, %v3795_v12  ;;  %v4019_v16 = vsel %vm4017_vm3, %v5169_v44, %v3799_v13 }
 0x2b4   :  { %4037 = vst [vmem:[#allocation11] sm:$0xff] %v4018_v15  ;;  %4039 = vst.msk [vmem:[#allocation11 + $0x8] sm:$0xff] %vm4038_vm4, %v4019_v16 }
 0x2b5   :  { %v4020_v19 = vsel %vm4017_vm3, %v5173_v46, %v3803_v17  ;;  %v4021_v20 = vsel %vm4017_vm3, %v5177_v37, %v3807_v14 }
 0x2b6   :  { %4042 = vst [vmem:[#allocation11 + $0x20] sm:$0xff] %v4020_v19  ;;  %4043 = vst.msk [vmem:[#allocation11 + $0x28] sm:$0xff] %vm4038_vm4, %v4021_v20 }
 0x2c2   :  { %v3444_v22 = vpop.f32.mrf.mxu1 }
 0x2c3   :  { %v3445_v23 = vadd.f32 %v3444_v22, %v5091_v25  ;;  %v3485_v45 = vpop.f32.mrf.mxu0 }
 0x2c4   :  { %v3446_v32 = vpop.f32.mrf.mxu1 }
 0x2c5   :  { %v3486_v34 = vadd.f32 %v3485_v45, %v3445_v23  ;;  %v3447_v35 = vadd.f32 %v3446_v32, %v5091_v25  ;;  %v3487_v24 = vpop.f32.mrf.mxu0 }
 0x2c6   :  { %v3448_v30 = vpop.f32.mrf.mxu1 }
 0x2c7   :  { %v3656_v26 = vsub.f32 0.0, %v3486_v34  ;;  %v3488_v27 = vadd.f32 %v3487_v24, %v3447_v35  ;;  %v3489_v28 = vpop.f32.mrf.mxu0 }
 0x2c8   :  { %v3449_v29 = vpop.f32.mrf.mxu1 }
 0x2c9   :  { %v3662_v44 = vmul.f32 1.442695, %v3656_v26  ;;  %v3657_v31 = vsub.f32 0.0, %v3488_v27  ;;  %v3490_v33 = vpop.f32.mrf.mxu0 }
 0x2cb   :  { %4849 = vpow2.f32 %v3662_v44  ;;  %v3664_v36 = vmul.f32 1.442695, %v3657_v31 }
 0x2cd   :  { %4851 = vpow2.f32 %v3664_v36 }
 0x2d8   :  { %v4850_v46 = vpop.eup %4849 }
 0x2d9   :  { %v3674_v37 = vadd.f32 1.0, %v4850_v46 }
 0x2da   :  { %v4852_v48 = vpop.eup %4851 }
 0x2db   :  { %v3675_v38 = vadd.f32 1.0, %v4852_v48  ;;  %4853 = vrcp.f32 %v3674_v37 }
 0x2dd   :  { %4855 = vrcp.f32 %v3675_v38 }
 0x2e8   :  { %v4854_v49 = vpop.eup %4853 }
 0x2ea   :  { %v4856_v39 = vpop.eup %4855 }
 0x2eb   :  { %v3814_v41 = vcombine.low %v4854_v49, %v4856_v39 }
 0x2ed   :  { %v3821_v42 = vrot.slane %v3814_v41, %v5119_v5 }
 0x2ef   :  { %v3822_v53 = vcombine.high %v3821_v42, %v3821_v42  ;;  %v3829_v54 = vrot.slane %v3821_v42, %v5119_v5 }
 0x2f1   :  { %v3836_v43 = vrot.slane %v3822_v53, %v5119_v5  ;;  %v3950_v47 = vrot.slane %v3829_v54, %v5051_v18  ;;  %v3954_v50 = vrot.slane %v3829_v54, %v5055_v21 }
 0x2f3   :  { %v3958_v51 = vrot.slane %v3836_v43, %v5051_v18  ;;  %v3962_v52 = vrot.slane %v3836_v43, %v5055_v21  ;;  %v4023_v55 = vsel %vm4022_vm5, %v3795_v12, %v3950_v47  ;;  %v4024_v56 = vsel %vm4022_vm5, %v3799_v13, %v3954_v50 }
 0x2f5   :  { %v4025_v57 = vsel %vm4022_vm5, %v3803_v17, %v3958_v51  ;;  %v4026_v58 = vsel %vm4022_vm5, %v3807_v14, %v3962_v52 }
 0x302   :  { %v3526_v59 = vpop.f32.mrf.mxu1 }
 0x303   :  { %v3527_v60 = vadd.f32 %v3526_v59, %v5091_v25  ;;  %v3567_v61 = vpop.f32.mrf.mxu0 }
 0x304   :  { %v3528_v7 = vpop.f32.mrf.mxu1 }
 0x305   :  { %v3568_v62 = vadd.f32 %v3567_v61, %v3527_v60  ;;  %v3529_v40 = vadd.f32 %v3528_v7, %v5091_v25  ;;  %v3569_v0 = vpop.f32.mrf.mxu0 }
 0x306   :  { %v3530_v63 = vpop.f32.mrf.mxu1 }
 0x307   :  { %v3658_v2 = vsub.f32 0.0, %v3568_v62  ;;  %v3570_v1 = vadd.f32 %v3569_v0, %v3529_v40  ;;  %v3571_v3 = vpop.f32.mrf.mxu0 }
 0x308   :  { %v3531_v4 = vpop.f32.mrf.mxu1 }
 0x309   :  { %v3666_v6 = vmul.f32 1.442695, %v3658_v2  ;;  %v3659_v8 = vsub.f32 0.0, %v3570_v1  ;;  %v3572_v9 = vpop.f32.mrf.mxu0 }
 0x30b   :  { %4857 = vpow2.f32 %v3666_v6  ;;  %v3668_v10 = vmul.f32 1.442695, %v3659_v8 }
 0x30d   :  { %4859 = vpow2.f32 %v3668_v10 }
 0x318   :  { %v4858_v11 = vpop.eup %4857 }
 0x319   :  { %v3676_v12 = vadd.f32 1.0, %v4858_v11 }
 0x31a   :  { %v4860_v13 = vpop.eup %4859 }
 0x31b   :  { %v3677_v17 = vadd.f32 1.0, %v4860_v13  ;;  %4861 = vrcp.f32 %v3676_v12 }
 0x31d   :  { %4863 = vrcp.f32 %v3677_v17 }
 0x328   :  { %v4862_v14 = vpop.eup %4861 }
 0x32a   :  { %v4864_v15 = vpop.eup %4863 }
 0x32b   :  { %v3839_v16 = vcombine.low %v4862_v14, %v4864_v15 }
 0x32d   :  { %v3846_v19 = vrot.slane %v3839_v16, %v5119_v5 }
 0x32f   :  { %v3847_v20 = vcombine.high %v3846_v19, %v3846_v19  ;;  %v3854_v22 = vrot.slane %v3846_v19, %v5119_v5 }
 0x331   :  { %v3861_v23 = vrot.slane %v3847_v20, %v5119_v5  ;;  %v3970_v45 = vrot.slane %v3854_v22, %v5051_v18  ;;  %v3974_v32 = vrot.slane %v3854_v22, %v5055_v21 }
 0x333   :  { %v3978_v34 = vrot.slane %v3861_v23, %v5051_v18  ;;  %v3982_v35 = vrot.slane %v3861_v23, %v5055_v21  ;;  %v4028_v24 = vsel %vm4027_vm6, %v4023_v55, %v3970_v45  ;;  %v4029_v30 = vsel %vm4027_vm6, %v4024_v56, %v3974_v32 }
 0x335   :  { %v4030_v26 = vsel %vm4027_vm6, %v4025_v57, %v3978_v34  ;;  %v4031_v27 = vsel %vm4027_vm6, %v4026_v58, %v3982_v35 }
 0x342   :  { %v3608_v28 = vpop.f32.mrf.mxu1 }
 0x343   :  { %v3609_v29 = vadd.f32 %v3608_v28, %v5091_v25  ;;  %v3649_v44 = vpop.f32.mrf.mxu0 }
 0x344   :  { %v3610_v31 = vpop.f32.mrf.mxu1 }
 0x345   :  { %v3650_v33 = vadd.f32 %v3649_v44, %v3609_v29  ;;  %v3611_v36 = vadd.f32 %v3610_v31, %v5091_v25  ;;  %v3651_v46 = vpop.f32.mrf.mxu0 }
 0x346   :  { %v3612_v37 = vpop.f32.mrf.mxu1 }
 0x347   :  { %v3660_v48 = vsub.f32 0.0, %v3650_v33  ;;  %v3652_v38 = vadd.f32 %v3651_v46, %v3611_v36  ;;  %v3653_v49 = vpop.f32.mrf.mxu0 }
 0x348   :  { %v3613_v39 = vpop.f32.mrf.mxu1 }
 0x349   :  { %v3670_v41 = vmul.f32 1.442695, %v3660_v48  ;;  %v3661_v42 = vsub.f32 0.0, %v3652_v38  ;;  %v3654_v53 = vpop.f32.mrf.mxu0 }
 0x34b   :  { %4865 = vpow2.f32 %v3670_v41  ;;  %v3672_v54 = vmul.f32 1.442695, %v3661_v42 }
 0x34d   :  { %4867 = vpow2.f32 %v3672_v54 }
 0x358   :  { %v4866_v43 = vpop.eup %4865 }
 0x359   :  { %v3678_v47 = vadd.f32 1.0, %v4866_v43 }
 0x35a   :  { %v4868_v50 = vpop.eup %4867 }
 0x35b   :  { %v3679_v51 = vadd.f32 1.0, %v4868_v50  ;;  %4869 = vrcp.f32 %v3678_v47 }
 0x35d   :  { %4871 = vrcp.f32 %v3679_v51 }
 0x368   :  { %v4870_v52 = vpop.eup %4869 }
 0x36a   :  { %v4872_v25 = vpop.eup %4871 }
 0x36b   :  { %v3864_v55 = vcombine.low %v4870_v52, %v4872_v25 }
 0x36d   :  { %v3871_v56 = vrot.slane %v3864_v55, %v5119_v5 }
 0x36f   :  { %v3872_v57 = vcombine.high %v3871_v56, %v3871_v56  ;;  %v3879_v58 = vrot.slane %v3871_v56, %v5119_v5 }
 0x371   :  { %v3886_v59 = vrot.slane %v3872_v57, %v5119_v5  ;;  %v3990_v60 = vrot.slane %v3879_v58, %v5051_v18  ;;  %v3994_v61 = vrot.slane %v3879_v58, %v5055_v21 }
 0x373   :  { %v3998_v7 = vrot.slane %v3886_v59, %v5051_v18  ;;  %v4002_v62 = vrot.slane %v3886_v59, %v5055_v21  ;;  %v4033_v40 = vsel %vm4032_vm7, %v4028_v24, %v3990_v60  ;;  %v4034_v0 = vsel %vm4032_vm7, %v4029_v30, %v3994_v61 }
 0x374   :  { %4040 = vst [vmem:[#allocation11 + $0x10] sm:$0xff] %v4033_v40  ;;  %4041 = vst.msk [vmem:[#allocation11 + $0x18] sm:$0xff] %vm4038_vm4, %v4034_v0 }
 0x375   :  { %v4035_v63 = vsel %vm4032_vm7, %v4030_v26, %v3998_v7  ;;  %v4036_v2 = vsel %vm4032_vm7, %v4031_v27, %v4002_v62 }
 0x376   :  { %4044 = vst [vmem:[#allocation11 + $0x30] sm:$0xff] %v4035_v63  ;;  %4045 = vst.msk [vmem:[#allocation11 + $0x38] sm:$0xff] %vm4038_vm4, %v4036_v2 }
 0x377   :  { %4965 = shalt.err (!%p4962_p10)
}
 0x378   :  { %s4993_s22 = smov 256   ;;  %s4994_s23 = smov 16  }
 0x379   :  { %4057 = dma.vmem_to_hbm [thread:$0]  %s4052_s20, 1024, %s5234_s6, [#allocation5], %s4993_s22, %s4993_s22, %s4994_s23  }
 0x37a   :  { %4980 = dma.done.wait [#allocation5], 1024  }
 0x37b   :  { %4981 = vsyncadd [#allocation5], 4294966272 }
 0x37c   :  { %4061 = vsyncpa [#allocation4], 1 }
 0x37d   :  { %4062 = vsyncpa [#allocation7], 1 }
 0x37e   :  { %4063 = vsyncpa [#allocation10], 1 }
 0x37f   :  { %4064 = vsyncpa [#allocation5], 1 }

</bundles_post_ra>
